<compile_context>
chip_gen: v6e
topology: v6e:2x2x1
jax: 0.10.0
libtpu: 0.0.40
codegen_flags: <defaults>
</compile_context>

<pallas_src>
import math
import functools

import jax
import jax.numpy as jnp
from jax import lax
from jax.experimental import pallas as pl
from jax.experimental.pallas import tpu as pltpu


def cross_attention_kernel(
    q_ref, k_ref, v_ref, w_ref, vec_ref, o_ref,
    *, num_heads, head_dim_p, d_model, eps,
):
    TB, S, Dp = q_ref.shape
    rows = TB * S
    H = num_heads
    hdp = head_dim_p
    f32 = jnp.float32
    bf16 = jnp.bfloat16

    # Fold the batch tile into the matmul M dimension.
    q2 = q_ref[...].reshape(rows, Dp)          # f32, kept exact for the residual
    k2 = k_ref[...].reshape(rows, Dp)
    v2 = v_ref[...].reshape(rows, Dp)

    vec = vec_ref[...]
    bq, bk, bv, bo = vec[0:1, :], vec[1:2, :], vec[2:3, :], vec[3:4, :]
    gamma, beta, lane_mask = vec[4:5, :], vec[5:6, :], vec[6:7, :]

    # Q/K/V projections: bf16 MXU inputs, f32 accumulation, lane-dense N = Dp.
    # (1/sqrt(head_dim) is already folded into wq/bq by the wrapper.)
    Q = jnp.dot(q2.astype(bf16), w_ref[0], preferred_element_type=f32) + bq
    K = jnp.dot(k2.astype(bf16), w_ref[1], preferred_element_type=f32) + bk
    V = jnp.dot(v2.astype(bf16), w_ref[2], preferred_element_type=f32) + bv

    # Head split: (rows, Dp) -> (H*TB, S, hdp) via static lane slices + a major-axis
    # concat; all attention compute below is one batched contraction over b = H*TB.
    def to_heads(x):
        x3 = x.reshape(TB, S, Dp)
        return jnp.concatenate(
            [x3[:, :, h * hdp:(h + 1) * hdp] for h in range(H)], axis=0)

    Qh = to_heads(Q.astype(bf16))
    Kh = to_heads(K.astype(bf16))
    Vh = to_heads(V.astype(bf16))

    # Scaled dot-product attention (scale pre-folded); K consumed untransposed.
    s = jnp.einsum("bqd,bkd->bqk", Qh, Kh, preferred_element_type=f32)
    m = jnp.max(s, axis=-1, keepdims=True)
    p = jnp.exp(s - m)
    l = jnp.sum(p, axis=-1, keepdims=True)
    probs = p * pl.reciprocal(l, approx=True)           # EUP slot, frees the VPU
    ctx = jnp.einsum("bqk,bkd->bqd", probs.astype(bf16), Vh,
                     preferred_element_type=f32)

    # Merge heads back to (rows, Dp) and apply the output projection (lane-dense N).
    ctx_bf = ctx.astype(bf16)
    attn = jnp.concatenate(
        [ctx_bf[h * TB:(h + 1) * TB] for h in range(H)], axis=-1)
    attn_out = jnp.dot(attn.reshape(rows, Dp), w_ref[3],
                       preferred_element_type=f32) + bo

    # Residual + two-pass LayerNorm over the true d_model.  Padded lanes of q2/attn_out
    # are zero, so mean = sum/D is exact; the lane mask removes the padded lanes from the
    # centered sum-of-squares (each would otherwise contribute mean^2).
    y = q2 + attn_out
    inv_d = 1.0 / d_model
    mean = jnp.sum(y, axis=-1, keepdims=True) * inv_d
    diff = (y - mean) * lane_mask
    var = jnp.sum(diff * diff, axis=-1, keepdims=True) * inv_d
    out = diff * lax.rsqrt(var + eps) * gamma + beta    # padded lanes -> 0

    o_ref[...] = out.reshape(TB, S, Dp).astype(o_ref.dtype)


def _single_buffered_spec(shape, index_map):
    """Constant (never re-fetched) block: request a single pipeline buffer if supported."""
    if hasattr(pl, "Buffered"):
        try:
            return pl.BlockSpec(shape, index_map, pipeline_mode=pl.Buffered(1))
        except TypeError:
            pass
    return pl.BlockSpec(shape, index_map)


def _vmem_capacity_bytes():
    # Conservative fallback (v7x per-core VMEM) if the trace-time query is unavailable.
    fallback = 64 * 1024 * 1024
    try:
        info = pltpu.get_tpu_info()
        cap = getattr(info, "vmem_capacity_bytes", None)
        if cap:
            return int(cap)
    except Exception:
        pass
    return fallback


def _footprint_bytes(TB, S, Dp, H, weight_bytes):
    rows = TB * S
    act_blk = TB * S * Dp * 4
    io = 2 * 4 * act_blk                      # double-buffered q/k/v/out activation blocks
    tmp = 12 * rows * Dp * 4                  # Q/K/V, head splits, ctx, attn, y, out temporaries
    scores = 3 * H * TB * S * S * 4           # s / p / probs
    return io + weight_bytes + tmp + scores


def _pick_batch_tile(B, S, Dp, H, weight_bytes, budget):
    """Largest batch tile whose VMEM footprint fits the budget.  Only keep >= 2 grid steps
    (v7x megacore sharding) when that does not shrink the matmul M dimension below a full
    128-row MXU pass; on 1-TC v5e/v6e extra grid steps are pure per-step overhead."""
    divisors = [d for d in range(1, B + 1) if B % d == 0]
    fitting = [d for d in divisors
               if _footprint_bytes(d, S, Dp, H, weight_bytes) <= budget]
    if not fitting:
        return 1
    best = max(fitting)
    if best == B and B > 1:
        smaller = [d for d in fitting if d < B and d * S >= 128]
        if smaller:
            best = max(smaller)
    return best


def cross_attention(q, k, v, params, *, num_heads, eps=1e-5):
    B, S, D = q.shape
    assert D % num_heads == 0
    hd = D // num_heads
    scale = 1.0 / math.sqrt(hd)

    # Pad head_dim so num_heads * hd_p is a multiple of the 128-lane width
    # (a no-op when D is already a multiple of 128).
    lane_q = 128 // math.gcd(num_heads, 128)
    hd_p = ((hd + lane_q - 1) // lane_q) * lane_q
    Dp = num_heads * hd_p

    def pad_w_in(w):      # Wq/Wk/Wv: input rows end-padded, output cols padded per head
        w = w.reshape(D, num_heads, hd)
        w = jnp.pad(w, ((0, Dp - D), (0, 0), (0, hd_p - hd)))
        return w.reshape(Dp, Dp)

    def pad_w_out(w):     # Wo: input rows padded per head, output cols end-padded
        w = w.reshape(num_heads, hd, D)
        w = jnp.pad(w, ((0, 0), (0, hd_p - hd), (0, Dp - D)))
        return w.reshape(Dp, Dp)

    def pad_vec_head(b):  # per-head padded vector (bq/bk/bv)
        b = b.reshape(num_heads, hd)
        return jnp.pad(b, ((0, 0), (0, hd_p - hd))).reshape(Dp)

    def pad_vec_end(b):   # end-padded vector (bo/gamma/beta/lane-mask)
        return jnp.pad(b.reshape(D), (0, Dp - D))

    # Softmax scale folded into the query projection; weights packed and cast to bf16
    # (f32 accumulation is requested inside the kernel).
    w_pack = jnp.stack(
        [pad_w_in(params["wq"] * scale), pad_w_in(params["wk"]),
         pad_w_in(params["wv"]), pad_w_out(params["wo"])],
        axis=0).astype(jnp.bfloat16)
    lane_mask = jnp.ones((D,), jnp.float32)
    zero = jnp.zeros((Dp,), jnp.float32)
    vec_pack = jnp.stack(
        [pad_vec_head(params["bq"] * scale), pad_vec_head(params["bk"]),
         pad_vec_head(params["bv"]), pad_vec_end(params["bo"]),
         pad_vec_end(params["gamma"]), pad_vec_end(params["beta"]),
         pad_vec_end(lane_mask), zero], axis=0)

    pad_x = lambda x: jnp.pad(x, ((0, 0), (0, 0), (0, Dp - D)))
    qp, kp, vp = pad_x(q), pad_x(k), pad_x(v)

    # Generation-aware VMEM budget (includes the S^2 score temporaries) and batch tile.
    weight_bytes = 4 * Dp * Dp * 2 + 8 * Dp * 4     # single-buffered bf16 weights + f32 vectors
    vmem_cap = _vmem_capacity_bytes()
    budget = int(0.7 * vmem_cap)
    TB = _pick_batch_tile(B, S, Dp, num_heads, weight_bytes, budget)
    grid = (B // TB,)

    est = _footprint_bytes(TB, S, Dp, num_heads, weight_bytes)
    vmem_limit = int(min(max(int(1.25 * est), 32 * 1024 * 1024),
                         int(0.85 * vmem_cap)))

    kernel = functools.partial(
        cross_attention_kernel, num_heads=num_heads,
        head_dim_p=hd_p, d_model=D, eps=eps)

    x_spec = pl.BlockSpec((TB, S, Dp), lambda b: (b, 0, 0))
    w_spec = _single_buffered_spec((4, Dp, Dp), lambda b: (0, 0, 0))
    vec_spec = _single_buffered_spec((8, Dp), lambda b: (0, 0))

    out_p = pl.pallas_call(
        kernel,
        out_shape=jax.ShapeDtypeStruct((B, S, Dp), q.dtype),
        grid_spec=pltpu.PrefetchScalarGridSpec(
            num_scalar_prefetch=0,
            grid=grid,
            in_specs=[x_spec, x_spec, x_spec, w_spec, vec_spec],
            out_specs=x_spec,
        ),
        compiler_params=pltpu.CompilerParams(
            dimension_semantics=("parallel",),
            vmem_limit_bytes=vmem_limit,
        ),
    )(qp, kp, vp, w_pack, vec_pack)

    return out_p[..., :D]


def reference_cross_attention(q, k, v, params, *, num_heads):
    """Pure-JAX f32 reference mirroring the PyTorch forward (eval mode, mask=None)."""
    B, S, D = q.shape
    hd = D // num_heads

    def proj(x, w, b):
        return x @ w + b

    Q = proj(q, params["wq"], params["bq"]).reshape(B, S, num_heads, hd).transpose(0, 2, 1, 3)
    K = proj(k, params["wk"], params["bk"]).reshape(B, S, num_heads, hd).transpose(0, 2, 1, 3)
    V = proj(v, params["wv"], params["bv"]).reshape(B, S, num_heads, hd).transpose(0, 2, 1, 3)
    scores = jnp.einsum("bhqd,bhkd->bhqk", Q, K) / math.sqrt(hd)
    probs = jax.nn.softmax(scores, axis=-1)
    attn = jnp.einsum("bhqk,bhkd->bhqd", probs, V).transpose(0, 2, 1, 3).reshape(B, S, D)
    attn_out = attn @ params["wo"] + params["bo"]
    y = q + attn_out
    mean = jnp.mean(y, axis=-1, keepdims=True)
    var = jnp.mean((y - mean) ** 2, axis=-1, keepdims=True)
    return (y - mean) * lax.rsqrt(var + 1e-5) * params["gamma"] + params["beta"]


if __name__ == "__main__":
    B, S, D = 2, 8, 32
    num_heads = 8

    key = jax.random.PRNGKey(0)
    keys = jax.random.split(key, 12)

    scale = 1.0 / math.sqrt(D)
    params = {
        "wq": jax.random.uniform(keys[0], (D, D), jnp.float32, -scale, scale),
        "bq": jax.random.uniform(keys[1], (1, D), jnp.float32, -scale, scale),
        "wk": jax.random.uniform(keys[2], (D, D), jnp.float32, -scale, scale),
        "bk": jax.random.uniform(keys[3], (1, D), jnp.float32, -scale, scale),
        "wv": jax.random.uniform(keys[4], (D, D), jnp.float32, -scale, scale),
        "bv": jax.random.uniform(keys[5], (1, D), jnp.float32, -scale, scale),
        "wo": jax.random.uniform(keys[6], (D, D), jnp.float32, -scale, scale),
        "bo": jax.random.uniform(keys[7], (1, D), jnp.float32, -scale, scale),
        "gamma": jnp.ones((1, D), jnp.float32),
        "beta": jnp.zeros((1, D), jnp.float32),
    }

    q = jax.random.normal(keys[8], (B, S, D), jnp.float32)
    k = jax.random.normal(keys[9], (B, S, D), jnp.float32)
    v = jax.random.normal(keys[10], (B, S, D), jnp.float32)

    out = cross_attention(q, k, v, params, num_heads=num_heads)
    out = jax.block_until_ready(out)

    ref = reference_cross_attention(q, k, v, params, num_heads=num_heads)
    assert out.shape == (B, S, D)
    # Tolerance accounts for bf16 MXU inputs (weights + activations) and the EUP
    # approximate reciprocal in the softmax denominator; the reference is pure f32.
    assert jnp.allclose(out, ref, atol=3e-2, rtol=3e-2), "mismatch vs pure-JAX reference"

    print("KERNEL_OK")
</pallas_src>

<mosaic_0001>
module attributes {stable_mosaic.version = 11 : i64} {
  func.func @cross_attention_kernel(%arg0: i32, %arg1: memref<2x8x128xf32, #tpu.memory_space<vmem>>, %arg2: memref<2x8x128xf32, #tpu.memory_space<vmem>>, %arg3: memref<2x8x128xf32, #tpu.memory_space<vmem>>, %arg4: memref<4x128x128xbf16, #tpu.memory_space<vmem>>, %arg5: memref<8x128xf32, #tpu.memory_space<vmem>>, %arg6: memref<2x8x128xf32, #tpu.memory_space<vmem>>) attributes {dimension_semantics = [#tpu.dimension_semantics<parallel>], iteration_bounds = array<i64: 1>, scalar_prefetch = 0 : i64, scratch_operands = 0 : i64, tpu.core_type = #tpu.core_type<tc>, window_params = [{transform_indices = @transform_0, window_bounds = array<i64: 2, 8, 128>}, {transform_indices = @transform_1, window_bounds = array<i64: 2, 8, 128>}, {transform_indices = @transform_2, window_bounds = array<i64: 2, 8, 128>}, {pipeline_mode = #tpu.pipeline_mode<synchronous>, transform_indices = @transform_3, window_bounds = array<i64: 4, 128, 128>}, {pipeline_mode = #tpu.pipeline_mode<synchronous>, transform_indices = @transform_4, window_bounds = array<i64: 8, 128>}, {transform_indices = @transform_5, window_bounds = array<i64: 2, 8, 128>}]} {
    %c0 = arith.constant 0 : index
    %c0_0 = arith.constant 0 : index
    %c0_1 = arith.constant 0 : index
    %0 = vector.load %arg1[%c0, %c0_0, %c0_1] : memref<2x8x128xf32, #tpu.memory_space<vmem>>, vector<2x8x128xf32>
    %1 = vector.shape_cast %0 : vector<2x8x128xf32> to vector<16x128xf32>
    %c0_2 = arith.constant 0 : index
    %c0_3 = arith.constant 0 : index
    %c0_4 = arith.constant 0 : index
    %2 = vector.load %arg2[%c0_2, %c0_3, %c0_4] : memref<2x8x128xf32, #tpu.memory_space<vmem>>, vector<2x8x128xf32>
    %3 = vector.shape_cast %2 : vector<2x8x128xf32> to vector<16x128xf32>
    %c0_5 = arith.constant 0 : index
    %c0_6 = arith.constant 0 : index
    %c0_7 = arith.constant 0 : index
    %4 = vector.load %arg3[%c0_5, %c0_6, %c0_7] : memref<2x8x128xf32, #tpu.memory_space<vmem>>, vector<2x8x128xf32>
    %5 = vector.shape_cast %4 : vector<2x8x128xf32> to vector<16x128xf32>
    %c0_8 = arith.constant 0 : index
    %c0_9 = arith.constant 0 : index
    %6 = vector.load %arg5[%c0_8, %c0_9] : memref<8x128xf32, #tpu.memory_space<vmem>>, vector<8x128xf32>
    %7 = vector.extract_strided_slice %6 {offsets = [0, 0], sizes = [1, 128], strides = [1, 1]} : vector<8x128xf32> to vector<1x128xf32>
    %8 = vector.extract_strided_slice %6 {offsets = [1, 0], sizes = [1, 128], strides = [1, 1]} : vector<8x128xf32> to vector<1x128xf32>
    %9 = vector.extract_strided_slice %6 {offsets = [2, 0], sizes = [1, 128], strides = [1, 1]} : vector<8x128xf32> to vector<1x128xf32>
    %10 = vector.extract_strided_slice %6 {offsets = [3, 0], sizes = [1, 128], strides = [1, 1]} : vector<8x128xf32> to vector<1x128xf32>
    %11 = vector.extract_strided_slice %6 {offsets = [4, 0], sizes = [1, 128], strides = [1, 1]} : vector<8x128xf32> to vector<1x128xf32>
    %12 = vector.extract_strided_slice %6 {offsets = [5, 0], sizes = [1, 128], strides = [1, 1]} : vector<8x128xf32> to vector<1x128xf32>
    %13 = vector.extract_strided_slice %6 {offsets = [6, 0], sizes = [1, 128], strides = [1, 1]} : vector<8x128xf32> to vector<1x128xf32>
    %14 = arith.truncf %1 : vector<16x128xf32> to vector<16x128xbf16>
    %c0_10 = arith.constant 0 : index
    %c0_11 = arith.constant 0 : index
    %c0_12 = arith.constant 0 : index
    %15 = vector.load %arg4[%c0_10, %c0_11, %c0_12] : memref<4x128x128xbf16, #tpu.memory_space<vmem>>, vector<1x128x128xbf16>
    %16 = vector.shape_cast %15 : vector<1x128x128xbf16> to vector<128x128xbf16>
    %cst = arith.constant dense<0.000000e+00> : vector<16x128xf32>
    %17 = tpu.matmul %14, %16, %cst {dimension_numbers = #tpu.dot_dimension_numbers<[1], [0], [0], [1], [0, 0, 1, 1], [], []>} : vector<16x128xbf16>, vector<128x128xbf16>, vector<16x128xf32> -> vector<16x128xf32>
    %18 = vector.broadcast %7 : vector<1x128xf32> to vector<16x128xf32>
    %19 = arith.addf %17, %18 : vector<16x128xf32>
    %20 = arith.truncf %3 : vector<16x128xf32> to vector<16x128xbf16>
    %c1 = arith.constant 1 : index
    %c0_13 = arith.constant 0 : index
    %c0_14 = arith.constant 0 : index
    %21 = vector.load %arg4[%c1, %c0_13, %c0_14] : memref<4x128x128xbf16, #tpu.memory_space<vmem>>, vector<1x128x128xbf16>
    %22 = vector.shape_cast %21 : vector<1x128x128xbf16> to vector<128x128xbf16>
    %cst_15 = arith.constant dense<0.000000e+00> : vector<16x128xf32>
    %23 = tpu.matmul %20, %22, %cst_15 {dimension_numbers = #tpu.dot_dimension_numbers<[1], [0], [0], [1], [0, 0, 1, 1], [], []>} : vector<16x128xbf16>, vector<128x128xbf16>, vector<16x128xf32> -> vector<16x128xf32>
    %24 = vector.broadcast %8 : vector<1x128xf32> to vector<16x128xf32>
    %25 = arith.addf %23, %24 : vector<16x128xf32>
    %26 = arith.truncf %5 : vector<16x128xf32> to vector<16x128xbf16>
    %c2 = arith.constant 2 : index
    %c0_16 = arith.constant 0 : index
    %c0_17 = arith.constant 0 : index
    %27 = vector.load %arg4[%c2, %c0_16, %c0_17] : memref<4x128x128xbf16, #tpu.memory_space<vmem>>, vector<1x128x128xbf16>
    %28 = vector.shape_cast %27 : vector<1x128x128xbf16> to vector<128x128xbf16>
    %cst_18 = arith.constant dense<0.000000e+00> : vector<16x128xf32>
    %29 = tpu.matmul %26, %28, %cst_18 {dimension_numbers = #tpu.dot_dimension_numbers<[1], [0], [0], [1], [0, 0, 1, 1], [], []>} : vector<16x128xbf16>, vector<128x128xbf16>, vector<16x128xf32> -> vector<16x128xf32>
    %30 = vector.broadcast %9 : vector<1x128xf32> to vector<16x128xf32>
    %31 = arith.addf %29, %30 : vector<16x128xf32>
    %32 = arith.truncf %19 : vector<16x128xf32> to vector<16x128xbf16>
    %33 = vector.shape_cast %32 : vector<16x128xbf16> to vector<2x8x128xbf16>
    %34 = vector.extract_strided_slice %33 {offsets = [0, 0, 0], sizes = [2, 8, 16], strides = [1, 1, 1]} : vector<2x8x128xbf16> to vector<2x8x16xbf16>
    %35 = vector.extract_strided_slice %33 {offsets = [0, 0, 16], sizes = [2, 8, 16], strides = [1, 1, 1]} : vector<2x8x128xbf16> to vector<2x8x16xbf16>
    %36 = vector.extract_strided_slice %33 {offsets = [0, 0, 32], sizes = [2, 8, 16], strides = [1, 1, 1]} : vector<2x8x128xbf16> to vector<2x8x16xbf16>
    %37 = vector.extract_strided_slice %33 {offsets = [0, 0, 48], sizes = [2, 8, 16], strides = [1, 1, 1]} : vector<2x8x128xbf16> to vector<2x8x16xbf16>
    %38 = vector.extract_strided_slice %33 {offsets = [0, 0, 64], sizes = [2, 8, 16], strides = [1, 1, 1]} : vector<2x8x128xbf16> to vector<2x8x16xbf16>
    %39 = vector.extract_strided_slice %33 {offsets = [0, 0, 80], sizes = [2, 8, 16], strides = [1, 1, 1]} : vector<2x8x128xbf16> to vector<2x8x16xbf16>
    %40 = vector.extract_strided_slice %33 {offsets = [0, 0, 96], sizes = [2, 8, 16], strides = [1, 1, 1]} : vector<2x8x128xbf16> to vector<2x8x16xbf16>
    %41 = vector.extract_strided_slice %33 {offsets = [0, 0, 112], sizes = [2, 8, 16], strides = [1, 1, 1]} : vector<2x8x128xbf16> to vector<2x8x16xbf16>
    %42 = tpu.concatenate %34, %35, %36, %37, %38, %39, %40, %41 in 0 : vector<2x8x16xbf16>, vector<2x8x16xbf16>, vector<2x8x16xbf16>, vector<2x8x16xbf16>, vector<2x8x16xbf16>, vector<2x8x16xbf16>, vector<2x8x16xbf16>, vector<2x8x16xbf16> -> vector<16x8x16xbf16>
    %43 = arith.truncf %25 : vector<16x128xf32> to vector<16x128xbf16>
    %44 = vector.shape_cast %43 : vector<16x128xbf16> to vector<2x8x128xbf16>
    %45 = vector.extract_strided_slice %44 {offsets = [0, 0, 0], sizes = [2, 8, 16], strides = [1, 1, 1]} : vector<2x8x128xbf16> to vector<2x8x16xbf16>
    %46 = vector.extract_strided_slice %44 {offsets = [0, 0, 16], sizes = [2, 8, 16], strides = [1, 1, 1]} : vector<2x8x128xbf16> to vector<2x8x16xbf16>
    %47 = vector.extract_strided_slice %44 {offsets = [0, 0, 32], sizes = [2, 8, 16], strides = [1, 1, 1]} : vector<2x8x128xbf16> to vector<2x8x16xbf16>
    %48 = vector.extract_strided_slice %44 {offsets = [0, 0, 48], sizes = [2, 8, 16], strides = [1, 1, 1]} : vector<2x8x128xbf16> to vector<2x8x16xbf16>
    %49 = vector.extract_strided_slice %44 {offsets = [0, 0, 64], sizes = [2, 8, 16], strides = [1, 1, 1]} : vector<2x8x128xbf16> to vector<2x8x16xbf16>
    %50 = vector.extract_strided_slice %44 {offsets = [0, 0, 80], sizes = [2, 8, 16], strides = [1, 1, 1]} : vector<2x8x128xbf16> to vector<2x8x16xbf16>
    %51 = vector.extract_strided_slice %44 {offsets = [0, 0, 96], sizes = [2, 8, 16], strides = [1, 1, 1]} : vector<2x8x128xbf16> to vector<2x8x16xbf16>
    %52 = vector.extract_strided_slice %44 {offsets = [0, 0, 112], sizes = [2, 8, 16], strides = [1, 1, 1]} : vector<2x8x128xbf16> to vector<2x8x16xbf16>
    %53 = tpu.concatenate %45, %46, %47, %48, %49, %50, %51, %52 in 0 : vector<2x8x16xbf16>, vector<2x8x16xbf16>, vector<2x8x16xbf16>, vector<2x8x16xbf16>, vector<2x8x16xbf16>, vector<2x8x16xbf16>, vector<2x8x16xbf16>, vector<2x8x16xbf16> -> vector<16x8x16xbf16>
    %54 = arith.truncf %31 : vector<16x128xf32> to vector<16x128xbf16>
    %55 = vector.shape_cast %54 : vector<16x128xbf16> to vector<2x8x128xbf16>
    %56 = vector.extract_strided_slice %55 {offsets = [0, 0, 0], sizes = [2, 8, 16], strides = [1, 1, 1]} : vector<2x8x128xbf16> to vector<2x8x16xbf16>
    %57 = vector.extract_strided_slice %55 {offsets = [0, 0, 16], sizes = [2, 8, 16], strides = [1, 1, 1]} : vector<2x8x128xbf16> to vector<2x8x16xbf16>
    %58 = vector.extract_strided_slice %55 {offsets = [0, 0, 32], sizes = [2, 8, 16], strides = [1, 1, 1]} : vector<2x8x128xbf16> to vector<2x8x16xbf16>
    %59 = vector.extract_strided_slice %55 {offsets = [0, 0, 48], sizes = [2, 8, 16], strides = [1, 1, 1]} : vector<2x8x128xbf16> to vector<2x8x16xbf16>
    %60 = vector.extract_strided_slice %55 {offsets = [0, 0, 64], sizes = [2, 8, 16], strides = [1, 1, 1]} : vector<2x8x128xbf16> to vector<2x8x16xbf16>
    %61 = vector.extract_strided_slice %55 {offsets = [0, 0, 80], sizes = [2, 8, 16], strides = [1, 1, 1]} : vector<2x8x128xbf16> to vector<2x8x16xbf16>
    %62 = vector.extract_strided_slice %55 {offsets = [0, 0, 96], sizes = [2, 8, 16], strides = [1, 1, 1]} : vector<2x8x128xbf16> to vector<2x8x16xbf16>
    %63 = vector.extract_strided_slice %55 {offsets = [0, 0, 112], sizes = [2, 8, 16], strides = [1, 1, 1]} : vector<2x8x128xbf16> to vector<2x8x16xbf16>
    %64 = tpu.concatenate %56, %57, %58, %59, %60, %61, %62, %63 in 0 : vector<2x8x16xbf16>, vector<2x8x16xbf16>, vector<2x8x16xbf16>, vector<2x8x16xbf16>, vector<2x8x16xbf16>, vector<2x8x16xbf16>, vector<2x8x16xbf16>, vector<2x8x16xbf16> -> vector<16x8x16xbf16>
    "tpu.trace_start"() <{level = 10 : i32, message = "bqd,bkd->bqk"}> : () -> ()
    %cst_19 = arith.constant dense<0.000000e+00> : vector<16x8x8xf32>
    %65 = tpu.matmul %42, %53, %cst_19 {dimension_numbers = #tpu.dot_dimension_numbers<[2], [2], [1], [1], [0, 0, 0, 1, 1, 1], [0], [0]>} : vector<16x8x16xbf16>, vector<16x8x16xbf16>, vector<16x8x8xf32> -> vector<16x8x8xf32>
    "tpu.trace_stop"() : () -> ()
    %cst_20 = arith.constant dense<0xFF800000> : vector<16x8xf32>
    %66 = vector.multi_reduction <maximumf>, %65, %cst_20 [2] : vector<16x8x8xf32> to vector<16x8xf32>
    %67 = vector.shape_cast %66 : vector<16x8xf32> to vector<16x8x1xf32>
    %68 = vector.broadcast %67 : vector<16x8x1xf32> to vector<16x8x8xf32>
    %69 = arith.subf %65, %68 : vector<16x8x8xf32>
    %70 = math.exp %69 : vector<16x8x8xf32>
    %cst_21 = arith.constant dense<0.000000e+00> : vector<16x8xf32>
    %71 = vector.multi_reduction <add>, %70, %cst_21 [2] : vector<16x8x8xf32> to vector<16x8xf32>
    %72 = vector.shape_cast %71 : vector<16x8xf32> to vector<16x8x1xf32>
    %73 = tpu.reciprocal %72 {approx = true} : vector<16x8x1xf32> -> vector<16x8x1xf32>
    %74 = vector.broadcast %73 : vector<16x8x1xf32> to vector<16x8x8xf32>
    %75 = arith.mulf %70, %74 : vector<16x8x8xf32>
    %76 = arith.truncf %75 : vector<16x8x8xf32> to vector<16x8x8xbf16>
    "tpu.trace_start"() <{level = 10 : i32, message = "bqk,bkd->bqd"}> : () -> ()
    %cst_22 = arith.constant dense<0.000000e+00> : vector<16x8x16xf32>
    %77 = tpu.matmul %76, %64, %cst_22 {dimension_numbers = #tpu.dot_dimension_numbers<[2], [1], [1], [2], [0, 0, 0, 1, 1, 2], [0], [0]>} : vector<16x8x8xbf16>, vector<16x8x16xbf16>, vector<16x8x16xf32> -> vector<16x8x16xf32>
    "tpu.trace_stop"() : () -> ()
    %78 = arith.truncf %77 : vector<16x8x16xf32> to vector<16x8x16xbf16>
    %79 = vector.extract_strided_slice %78 {offsets = [0, 0, 0], sizes = [2, 8, 16], strides = [1, 1, 1]} : vector<16x8x16xbf16> to vector<2x8x16xbf16>
    %80 = vector.extract_strided_slice %78 {offsets = [2, 0, 0], sizes = [2, 8, 16], strides = [1, 1, 1]} : vector<16x8x16xbf16> to vector<2x8x16xbf16>
    %81 = vector.extract_strided_slice %78 {offsets = [4, 0, 0], sizes = [2, 8, 16], strides = [1, 1, 1]} : vector<16x8x16xbf16> to vector<2x8x16xbf16>
    %82 = vector.extract_strided_slice %78 {offsets = [6, 0, 0], sizes = [2, 8, 16], strides = [1, 1, 1]} : vector<16x8x16xbf16> to vector<2x8x16xbf16>
    %83 = vector.extract_strided_slice %78 {offsets = [8, 0, 0], sizes = [2, 8, 16], strides = [1, 1, 1]} : vector<16x8x16xbf16> to vector<2x8x16xbf16>
    %84 = vector.extract_strided_slice %78 {offsets = [10, 0, 0], sizes = [2, 8, 16], strides = [1, 1, 1]} : vector<16x8x16xbf16> to vector<2x8x16xbf16>
    %85 = vector.extract_strided_slice %78 {offsets = [12, 0, 0], sizes = [2, 8, 16], strides = [1, 1, 1]} : vector<16x8x16xbf16> to vector<2x8x16xbf16>
    %86 = vector.extract_strided_slice %78 {offsets = [14, 0, 0], sizes = [2, 8, 16], strides = [1, 1, 1]} : vector<16x8x16xbf16> to vector<2x8x16xbf16>
    %87 = tpu.concatenate %79, %80, %81, %82, %83, %84, %85, %86 in 2 : vector<2x8x16xbf16>, vector<2x8x16xbf16>, vector<2x8x16xbf16>, vector<2x8x16xbf16>, vector<2x8x16xbf16>, vector<2x8x16xbf16>, vector<2x8x16xbf16>, vector<2x8x16xbf16> -> vector<2x8x128xbf16>
    %88 = vector.shape_cast %87 : vector<2x8x128xbf16> to vector<16x128xbf16>
    %c3 = arith.constant 3 : index
    %c0_23 = arith.constant 0 : index
    %c0_24 = arith.constant 0 : index
    %89 = vector.load %arg4[%c3, %c0_23, %c0_24] : memref<4x128x128xbf16, #tpu.memory_space<vmem>>, vector<1x128x128xbf16>
    %90 = vector.shape_cast %89 : vector<1x128x128xbf16> to vector<128x128xbf16>
    %cst_25 = arith.constant dense<0.000000e+00> : vector<16x128xf32>
    %91 = tpu.matmul %88, %90, %cst_25 {dimension_numbers = #tpu.dot_dimension_numbers<[1], [0], [0], [1], [0, 0, 1, 1], [], []>} : vector<16x128xbf16>, vector<128x128xbf16>, vector<16x128xf32> -> vector<16x128xf32>
    %92 = vector.broadcast %10 : vector<1x128xf32> to vector<16x128xf32>
    %93 = arith.addf %91, %92 : vector<16x128xf32>
    %94 = arith.addf %1, %93 : vector<16x128xf32>
    %cst_26 = arith.constant dense<0.000000e+00> : vector<16xf32>
    %95 = vector.multi_reduction <add>, %94, %cst_26 [1] : vector<16x128xf32> to vector<16xf32>
    %96 = vector.shape_cast %95 : vector<16xf32> to vector<16x1xf32>
    %cst_27 = arith.constant 3.125000e-02 : f32
    %97 = vector.broadcast %cst_27 : f32 to vector<16x1xf32>
    %98 = arith.mulf %96, %97 : vector<16x1xf32>
    %99 = vector.broadcast %98 : vector<16x1xf32> to vector<16x128xf32>
    %100 = arith.subf %94, %99 : vector<16x128xf32>
    %101 = vector.broadcast %13 : vector<1x128xf32> to vector<16x128xf32>
    %102 = arith.mulf %100, %101 : vector<16x128xf32>
    %103 = arith.mulf %102, %102 : vector<16x128xf32>
    %cst_28 = arith.constant dense<0.000000e+00> : vector<16xf32>
    %104 = vector.multi_reduction <add>, %103, %cst_28 [1] : vector<16x128xf32> to vector<16xf32>
    %105 = vector.shape_cast %104 : vector<16xf32> to vector<16x1xf32>
    %cst_29 = arith.constant 3.125000e-02 : f32
    %106 = vector.broadcast %cst_29 : f32 to vector<16x1xf32>
    %107 = arith.mulf %105, %106 : vector<16x1xf32>
    %cst_30 = arith.constant 9.99999974E-6 : f32
    %108 = vector.broadcast %cst_30 : f32 to vector<16x1xf32>
    %109 = arith.addf %107, %108 : vector<16x1xf32>
    %110 = math.rsqrt %109 : vector<16x1xf32>
    %111 = vector.broadcast %110 : vector<16x1xf32> to vector<16x128xf32>
    %112 = arith.mulf %102, %111 : vector<16x128xf32>
    %113 = vector.broadcast %11 : vector<1x128xf32> to vector<16x128xf32>
    %114 = arith.mulf %112, %113 : vector<16x128xf32>
    %115 = vector.broadcast %12 : vector<1x128xf32> to vector<16x128xf32>
    %116 = arith.addf %114, %115 : vector<16x128xf32>
    %117 = vector.shape_cast %116 : vector<16x128xf32> to vector<2x8x128xf32>
    %c0_31 = arith.constant 0 : index
    %c0_32 = arith.constant 0 : index
    %c0_33 = arith.constant 0 : index
    %118 = vector.load %arg6[%c0_31, %c0_32, %c0_33] : memref<2x8x128xf32, #tpu.memory_space<vmem>>, vector<2x8x128xf32>
    tpu.vector_store %arg6[%c0_31, %c0_32, %c0_33], %117 {strides = array<i32>} : memref<2x8x128xf32, #tpu.memory_space<vmem>>, vector<2x8x128xf32>,
    return
  }
  func.func @transform_0(%arg0: i32) -> (i32, i32, i32) {
    %c0_i32 = arith.constant 0 : i32
    %c0_i32_0 = arith.constant 0 : i32
    %c0_i32_1 = arith.constant 0 : i32
    return %arg0, %c0_i32, %c0_i32_0 : i32, i32, i32
  }
  func.func @transform_1(%arg0: i32) -> (i32, i32, i32) {
    %c0_i32 = arith.constant 0 : i32
    %c0_i32_0 = arith.constant 0 : i32
    %c0_i32_1 = arith.constant 0 : i32
    return %arg0, %c0_i32, %c0_i32_0 : i32, i32, i32
  }
  func.func @transform_2(%arg0: i32) -> (i32, i32, i32) {
    %c0_i32 = arith.constant 0 : i32
    %c0_i32_0 = arith.constant 0 : i32
    %c0_i32_1 = arith.constant 0 : i32
    return %arg0, %c0_i32, %c0_i32_0 : i32, i32, i32
  }
  func.func @transform_3(%arg0: i32) -> (i32, i32, i32) {
    %c0_i32 = arith.constant 0 : i32
    %c0_i32_0 = arith.constant 0 : i32
    %c0_i32_1 = arith.constant 0 : i32
    %c0_i32_2 = arith.constant 0 : i32
    return %c0_i32, %c0_i32_0, %c0_i32_1 : i32, i32, i32
  }
  func.func @transform_4(%arg0: i32) -> (i32, i32) {
    %c0_i32 = arith.constant 0 : i32
    %c0_i32_0 = arith.constant 0 : i32
    %c0_i32_1 = arith.constant 0 : i32
    return %c0_i32, %c0_i32_0 : i32, i32
  }
  func.func @transform_5(%arg0: i32) -> (i32, i32, i32) {
    %c0_i32 = arith.constant 0 : i32
    %c0_i32_0 = arith.constant 0 : i32
    %c0_i32_1 = arith.constant 0 : i32
    return %arg0, %c0_i32, %c0_i32_0 : i32, i32, i32
  }
}

</mosaic_0001>

<bundles_post_ra>
// kernel: tpu_custom_call.1
= control target key start
LH: loop header
LB: loop body
LE: loop exit
PB: predicated region body
PF: predicated region fallthrough
CT: control target
= control target key end

     0   :  { %10 = vsyncpa [#allocation3], 0  ;;  %s3729_s0 = inlined_call_operand.hbm [shape: f32[2,8,128], index: 0, kind: input, shape index: {}]   ;;  %s3730_s1 = inlined_call_operand.hbm [shape: f32[2,8,128], index: 1, kind: input, shape index: {}]   ;;  %s3731_s2 = inlined_call_operand.hbm [shape: f32[2,8,128], index: 2, kind: input, shape index: {}]   ;;  %s3732_s3 = inlined_call_operand.hbm [shape: bf16[4,128,128], index: 3, kind: input, shape index: {}]   ;;  %s3733_s4 = inlined_call_operand.hbm [shape: f32[8,128], index: 4, kind: input, shape index: {}]   ;;  %s3734_s5 = inlined_call_operand.hbm [shape: f32[2,8,128], index: 5, kind: output, shape index: {}]  }
   0x1   :  { %11 = vsyncpa [#allocation6], 0 }
   0x2   :  { %12 = vsyncpa [#allocation9], 0 }
   0x3   :  { %13 = vsyncpa [#allocation4], 0  ;;  %s3167_s18 = smov [#allocation5]   ;;  %s3168_s20 = smov [#allocation8]  }
   0x4   :  { %s31_s19 = sshll.u32 %s3167_s18, 4  ;;  %s55_s21 = sshll.u32 %s3168_s20, 4  ;;  %s32_s19 = int_to_ptr.vmem [resolvable:$true] %s31_s19  ;;  %s56_s21 = int_to_ptr.vmem [resolvable:$true] %s55_s21 }
   0x5   :  { %s3047_s22 = scalar_lea.vmem %s32_s19, 256  ;;  %p3052_p1 = scmp.lt.s32.totalorder %s32_s19, %s32_s19 }
   0x6   :  { %p3048_p0 = scmp.ne.s32.totalorder %s32_s19, %s3047_s22  ;;  %p3053_p2 = scmp.lt.s32.totalorder %s3047_s22, %s3047_s22 }
   0x8   :  { %p3054_p3 = por %p3053_p2, %p3052_p1 }
   0xa   :  { %p3055_p4 = pnand %p3054_p3, %p3048_p0 }
   0xc   :  { %3058 = shalt.err (!%p3055_p4)
}
   0xd   :  { %s3169_s23 = smov 128   ;;  %s3170_s24 = smov 8  }
   0xe   :  { %37 = dma.hbm_to_vmem [thread:$0]  %s3730_s1, 256, %s32_s19, [#allocation6], %s3169_s23, %s3169_s23, %s3170_s24  }
   0xf   :  { %s3067_s27 = scalar_lea.vmem %s56_s21, 4096  ;;  %p3072_p6 = scmp.lt.s32.totalorder %s56_s21, %s56_s21 }
  0x10   :  { %p3068_p5 = scmp.ne.s32.totalorder %s56_s21, %s3067_s27  ;;  %p3073_p7 = scmp.lt.s32.totalorder %s3067_s27, %s3067_s27 }
  0x12   :  { %p3074_p8 = por %p3073_p7, %p3072_p6 }
  0x14   :  { %p3075_p9 = pnand %p3074_p8, %p3068_p5 }
  0x16   :  { %3078 = shalt.err (!%p3075_p9)
}
  0x17   :  { %s3171_s28 = smov 64   ;;  %s3172_s29 = smov 4  }
  0x18   :  { %61 = dma.hbm_to_vmem [thread:$0]  %s3732_s3, 4096, %s56_s21, [#allocation9], %s3171_s28, %s3171_s28, %s3172_s29  }
  0x19   :  { %s3173_s7 = smov [#allocation2]   ;;  %s3174_s9 = smov [#allocation7]  }
  0x1a   :  { %s19_s8 = sshll.u32 %s3173_s7, 4  ;;  %s43_s10 = sshll.u32 %s3174_s9, 4  ;;  %s20_s8 = int_to_ptr.vmem [resolvable:$true] %s19_s8  ;;  %s44_s10 = int_to_ptr.vmem [resolvable:$true] %s43_s10 }
  0x1b   :  { %s3087_s1 = scalar_lea.vmem %s20_s8, 256  ;;  %p3092_p11 = scmp.lt.s32.totalorder %s20_s8, %s20_s8 }
  0x1c   :  { %p3088_p10 = scmp.ne.s32.totalorder %s20_s8, %s3087_s1  ;;  %p3093_p12 = scmp.lt.s32.totalorder %s3087_s1, %s3087_s1 }
  0x1e   :  { %p3094_p13 = por %p3093_p12, %p3092_p11 }
  0x20   :  { %p3095_p0 = pnand %p3094_p13, %p3088_p10 }
  0x22   :  { %3098 = shalt.err (!%p3095_p0)
}
  0x23   :  { %25 = dma.hbm_to_vmem [thread:$0]  %s3729_s0, 256, %s20_s8, [#allocation3], %s3169_s23, %s3169_s23, %s3170_s24  }
  0x24   :  { %s3107_s3 = scalar_lea.vmem %s44_s10, 256  ;;  %p3112_p2 = scmp.lt.s32.totalorder %s44_s10, %s44_s10 }
  0x25   :  { %p3108_p1 = scmp.ne.s32.totalorder %s44_s10, %s3107_s3  ;;  %p3113_p3 = scmp.lt.s32.totalorder %s3107_s3, %s3107_s3 }
  0x27   :  { %p3114_p4 = por %p3113_p3, %p3112_p2 }
  0x29   :  { %p3115_p5 = pnand %p3114_p4, %p3108_p1 }
  0x2b   :  { %3118 = shalt.err (!%p3115_p5)
}
  0x2c   :  { %49 = dma.hbm_to_vmem [thread:$0]  %s3731_s2, 256, %s44_s10, [#allocation6], %s3169_s23, %s3169_s23, %s3170_s24  }
  0x2d   :  { %s3175_s15 = smov [#allocation10]  }
  0x2e   :  { %s68_s16 = sshll.u32 %s3175_s15, 4  ;;  %s69_s16 = int_to_ptr.vmem [resolvable:$true] %s68_s16 }
  0x2f   :  { %s3127_s17 = scalar_lea.vmem %s69_s16, 128  ;;  %p3132_p7 = scmp.lt.s32.totalorder %s69_s16, %s69_s16 }
  0x30   :  { %p3128_p6 = scmp.ne.s32.totalorder %s69_s16, %s3127_s17  ;;  %p3133_p8 = scmp.lt.s32.totalorder %s3127_s17, %s3127_s17 }
  0x32   :  { %p3134_p9 = por %p3133_p8, %p3132_p7 }
  0x34   :  { %p3135_p10 = pnand %p3134_p9, %p3128_p6 }
  0x36   :  { %3138 = shalt.err (!%p3135_p10)
}
  0x37   :  { %71 = dma.hbm_to_vmem [thread:$0]  %s3733_s4, 128, %s69_s16, [#allocation9]  }
  0x38   :  { %3159 = dma.done.wait [#allocation3], 256  }
  0x39   :  { %3160 = vsyncadd [#allocation3], 4294967040 }
  0x3a   :  { %3161 = dma.done.wait [#allocation6], 512  }
  0x3b   :  { %3162 = vsyncadd [#allocation6], 4294966784 }
  0x3c   :  { %3163 = dma.done.wait [#allocation9], 4224  }
  0x3d   :  { %3164 = vsyncadd [#allocation9], 4294963072  ;;  %v3176_v0 = vmov 0.0   ;;  %vm3177_vm0 = vmmov 0   ;;  %v2936_v1 = vld [vmem:[#allocation8 + $0x78] sm:$0xff]   ;;  %v2938_v3 = vld [vmem:[#allocation8 + $0x70] sm:$0xff]   ;;  %v112_v25 = vlaneseq }
  0x3e   :  { %2666 = vmatprep.subr.bf16.mxu1 %v3176_v0  ;;  %2646 = vmatprep.subr.bf16.mxu0 %v3176_v0  ;;  %v2937_v2 = vld [vmem:[#allocation8 + $0x38] sm:$0xff]   ;;  %v2939_v4 = vld [vmem:[#allocation8 + $0x30] sm:$0xff]   ;;  %v2940_v5 = vld [vmem:[#allocation8 + $0x68] sm:$0xff]   ;;  %vm529_vm1 = vcmask 130048   ;;  %s3178_s2 = smov 112   ;;  %s3179_s4 = smov 96  }
  0x3f   :  { %2682 = vmatprep.mubr.msk.bf16.mxu1 %vm3177_vm0, %v3176_v0  ;;  %2662 = vmatprep.mubr.msk.bf16.mxu0 %vm3177_vm0, %v3176_v0  ;;  %v2941_v6 = vld [vmem:[#allocation8 + $0x28] sm:$0xff]   ;;  %v2942_v7 = vld [vmem:[#allocation8 + $0x60] sm:$0xff]   ;;  %v2944_v9 = vld [vmem:[#allocation8 + $0x58] sm:$0xff]   ;;  %v3269_v26 = vshrl.u32 %v112_v25, 7  ;;  %s3180_s19 = smov 80   ;;  %s3181_s20 = smov 48  }
  0x40   :  { %2667 = vmatpush3.bf16.msra.mxu1 %v2936_v1  ;;  %2647 = vmatpush3.bf16.msra.mxu0 %v2937_v2  ;;  %v2943_v8 = vld [vmem:[#allocation8 + $0x20] sm:$0xff]   ;;  %v2945_v10 = vld [vmem:[#allocation8 + $0x18] sm:$0xff]   ;;  %v2946_v11 = vld [vmem:[#allocation8 + $0x50] sm:$0xff]   ;;  %s3182_s21 = smov 32   ;;  %s3183_s22 = smov 16   ;;  %vm1266_vm2 = vcmask 64512  }
  0x41   :  { %2668 = vmatprep.subr.bf16.mxu1 %v3176_v0  ;;  %2648 = vmatprep.subr.bf16.mxu0 %v3176_v0  ;;  %v2947_v12 = vld [vmem:[#allocation8 + $0x10] sm:$0xff]   ;;  %v2948_v13 = vld [vmem:[#allocation8 + $0x48] sm:$0xff]   ;;  %v2950_v15 = vld [vmem:[#allocation8 + $0x40] sm:$0xff]   ;;  %v225_v28 = vsub.s32 1, %v3269_v26  ;;  %v114_v30 = vsub.s32 0, %v3269_v26  ;;  %vm1462_vm3 = vcmask 1043456  }
  0x42   :  { %v2949_v14 = vld [vmem:[#allocation8 + $0x8] sm:$0xff]   ;;  %v90_v16 = vld [vmem:[#allocation5] sm:$0xff]  ;;  %v88_v19 = vld [vmem:[#allocation2] sm:$0xff]  ;;  %vm2260_vm4 = vcmask 261120   ;;  %vm2265_vm5 = vcmask 392192   ;;  %vm2270_vm6 = vcmask 523264  }
  0x43   :  { %v91_v17 = vld [vmem:[#allocation5 + $0x8] sm:$0xff]  ;;  %v2951_v18 = vld [vmem:[#allocation8] sm:$0xff]   ;;  %v89_v20 = vld [vmem:[#allocation2 + $0x8] sm:$0xff]  ;;  %vm2275_vm7 = vcmask 654336   ;;  %vm2280_vm8 = vcmask 785408   ;;  %vm2285_vm9 = vcmask 916480  }
  0x44   :  { %2669 = vmatpush3.bf16.msra.mxu1 %v2938_v3  ;;  %2649 = vmatpush3.bf16.msra.mxu0 %v2939_v4  ;;  %v205_v21 = vpack.c.bf16 %v91_v17, %v90_v16  ;;  %v95_v22 = vpack.c.bf16 %v89_v20, %v88_v19  ;;  %v2952_v23 = vld [vmem:[#allocation8 + $0xb8] sm:$0xff]   ;;  %v2953_v24 = vld [vmem:[#allocation8 + $0xb0] sm:$0xff]   ;;  %v2954_v27 = vld [vmem:[#allocation8 + $0xa8] sm:$0xff]   ;;  %s3184_s25 = smov [#allocation11]  }
  0x45   :  { %2670 = vmatprep.subr.bf16.mxu1 %v3176_v0  ;;  %2650 = vmatprep.subr.bf16.mxu0 %v3176_v0  ;;  %v3272_v29 = vld [vmem:[#allocation10] sm:$0xff]  ;;  %v2956_v35 = vld [vmem:[#allocation8 + $0x98] sm:$0xff]   ;;  %v2957_v43 = vld [vmem:[#allocation8 + $0x90] sm:$0xff]   ;;  %s2455_s26 = sshll.u32 %s3184_s25, 4  ;;  %s2456_s26 = int_to_ptr.vmem [resolvable:$true] %s2455_s26 }
  0x46   :  { %v2955_v31 = vld [vmem:[#allocation8 + $0xa0] sm:$0xff]   ;;  %v226_v32 = vrot.slane %v3272_v29, %v225_v28  ;;  %v115_v33 = vrot.slane %v3272_v29, %v114_v30  ;;  %v2958_v52 = vld [vmem:[#allocation8 + $0x88] sm:$0xff]   ;;  %v92_v56 = vld [vmem:[#allocation7] sm:$0xff]  ;;  %s3139_s27 = scalar_lea.vmem %s2456_s26, 256  ;;  %p3144_p12 = scmp.lt.s32.totalorder %s2456_s26, %s2456_s26 }
  0x47   :  { %v2959_v54 = vld [vmem:[#allocation8 + $0x80] sm:$0xff]   ;;  %v93_v57 = vld [vmem:[#allocation7 + $0x8] sm:$0xff]  ;;  %p3140_p11 = scmp.ne.s32.totalorder %s2456_s26, %s3139_s27  ;;  %p3145_p13 = scmp.lt.s32.totalorder %s3139_s27, %s3139_s27 }
  0x48   :  { %2671 = vmatpush3.bf16.msra.mxu1 %v2940_v5  ;;  %2651 = vmatpush3.bf16.msra.mxu0 %v2941_v6  ;;  %v316_v58 = vpack.c.bf16 %v93_v57, %v92_v56 }
  0x49   :  { %2672 = vmatprep.subr.bf16.mxu1 %v3176_v0  ;;  %2652 = vmatprep.subr.bf16.mxu0 %v3176_v0  ;;  %p3146_p0 = por %p3145_p13, %p3144_p12 }
  0x4b   :  { %p3147_p1 = pnand %p3146_p0, %p3140_p11 }
  0x4c   :  { %2673 = vmatpush3.bf16.msra.mxu1 %v2942_v7  ;;  %2653 = vmatpush3.bf16.msra.mxu0 %v2943_v8 }
  0x4d   :  { %2674 = vmatprep.subr.bf16.mxu1 %v3176_v0  ;;  %2654 = vmatprep.subr.bf16.mxu0 %v3176_v0 }
  0x50   :  { %2675 = vmatpush3.bf16.msra.mxu1 %v2944_v9  ;;  %2655 = vmatpush3.bf16.msra.mxu0 %v2945_v10 }
  0x51   :  { %2676 = vmatprep.subr.bf16.mxu1 %v3176_v0  ;;  %2656 = vmatprep.subr.bf16.mxu0 %v3176_v0 }
  0x54   :  { %2677 = vmatpush3.bf16.msra.mxu1 %v2946_v11  ;;  %2657 = vmatpush3.bf16.msra.mxu0 %v2947_v12 }
  0x55   :  { %2678 = vmatprep.subr.bf16.mxu1 %v3176_v0  ;;  %2658 = vmatprep.subr.bf16.mxu0 %v3176_v0 }
  0x58   :  { %2679 = vmatpush3.bf16.msra.mxu1 %v2948_v13  ;;  %2659 = vmatpush3.bf16.msra.mxu0 %v2949_v14 }
  0x59   :  { %2680 = vmatprep.subr.bf16.mxu1 %v3176_v0  ;;  %2660 = vmatprep.subr.bf16.mxu0 %v3176_v0 }
  0x5c   :  { %2681 = vmatpush3.bf16.msra.mxu1 %v2950_v15  ;;  %2661 = vmatpush3.bf16.msra.mxu0 %v2951_v18 }
  0x5d   :  { %2706 = vmatprep.subr.bf16.mxu1 %v3176_v0  ;;  %2686 = vmatprep.subr.bf16.mxu0 %v3176_v0 }
  0x5f   :  { %2683 = vmatmul.mubr.bf16.vlgmr.msra.gmra.mxu1 %v205_v21  ;;  %2663 = vmatmul.mubr.bf16.vlgmr.msra.gmra.mxu0 %v95_v22 }
  0x60   :  { %2708 = vmatprep.mubr.msk.bf16.mxu1 %vm3177_vm0, %v3176_v0  ;;  %2702 = vmatprep.mubr.msk.bf16.mxu0 %vm3177_vm0, %v3176_v0 }
  0x61   :  { %2687 = vmatpush3.bf16.msra.mxu0 %v2952_v23 }
  0x62   :  { %2688 = vmatprep.subr.bf16.mxu0 %v3176_v0 }
  0x65   :  { %2689 = vmatpush3.bf16.msra.mxu0 %v2953_v24 }
  0x66   :  { %2690 = vmatprep.subr.bf16.mxu0 %v3176_v0 }
  0x69   :  { %2691 = vmatpush3.bf16.msra.mxu0 %v2954_v27 }
  0x6a   :  { %2692 = vmatprep.subr.bf16.mxu0 %v3176_v0 }
  0x6d   :  { %2693 = vmatpush3.bf16.msra.mxu0 %v2955_v31 }
  0x6e   :  { %2694 = vmatprep.subr.bf16.mxu0 %v3176_v0 }
  0x71   :  { %2695 = vmatpush3.bf16.msra.mxu0 %v2956_v35 }
  0x72   :  { %2696 = vmatprep.subr.bf16.mxu0 %v3176_v0 }
  0x75   :  { %2697 = vmatpush3.bf16.msra.mxu0 %v2957_v43 }
  0x76   :  { %2698 = vmatprep.subr.bf16.mxu0 %v3176_v0 }
  0x79   :  { %2699 = vmatpush3.bf16.msra.mxu0 %v2958_v52 }
  0x7a   :  { %2700 = vmatprep.subr.bf16.mxu0 %v3176_v0 }
  0x7d   :  { %2701 = vmatpush3.bf16.msra.mxu0 %v2959_v54  ;;  %v336_v54 = vsub.s32 2, %v3269_v26 }
  0x7e   :  { %2754 = vmatprep.subr.bf16.mxu0 %v3176_v0 }
  0x80   :  { %2703 = vmatmul.mubr.bf16.vlgmr.msra.gmra.mxu0 %v316_v58 }
  0x81   :  { %2756 = vmatprep.mubr.msk.bf16.mxu0 %vm3177_vm0, %v3176_v0 }
 0x11f   :  { %v309_v34 = vpop.f32.mrf.mxu1  ;;  %v198_v37 = vpop.f32.mrf.mxu0 }
 0x120   :  { %v310_v36 = vadd.f32 %v309_v34, %v226_v32  ;;  %v199_v39 = vadd.f32 %v198_v37, %v115_v33 }
 0x121   :  { %v2684_v38 = vpop.f32.mrf.mxu1  ;;  %v2664_v41 = vpop.f32.mrf.mxu0 }
 0x122   :  { %v3279_v40 = vpack.c.bf16 %v310_v36, %v310_v36  ;;  %v2540_v44 = vpack.c.bf16 %v199_v39, %v199_v39 }
 0x123   :  { %v312_v42 = vpop.f32.mrf.mxu1  ;;  %v201_v47 = vpop.f32.mrf.mxu0 }
 0x124   :  { %v313_v45 = vadd.f32 %v312_v42, %v226_v32  ;;  %467 = vrot.lane.b32.xlu0 %v3279_v40, %s3178_s2  ;;  %v534_v46 = vsel %vm529_vm1, %v3279_v40, 0  ;;  %v202_v49 = vadd.f32 %v201_v47, %v115_v33 }
 0x125   :  { %v2685_v48 = vpop.f32.mrf.mxu1  ;;  %2707 = vmatpush3.bf16.xpose.msra.mxu1 %v534_v46  ;;  %v2665_v51 = vpop.f32.mrf.mxu0 }
 0x126   :  { %v2543_v50 = vpack.c.bf16 %v313_v45, %v313_v45  ;;  %2712 = vmatprep.subr.bf16.mxu1 %v3176_v0  ;;  %v2541_v53 = vpack.c.bf16 %v202_v49, %v202_v49 }
 0x128   :  { %469 = vrot.lane.b32.xlu1 %v2543_v50, %s3178_s2  ;;  %433 = vrot.lane.b32.xlu0 %v2540_v44, %s3178_s2  ;;  %v580_v55 = vsel %vm529_vm1, %v2543_v50, 0 }
 0x12c   :  { %471 = vrot.lane.b32.xlu0 %v3279_v40, %s3179_s4  ;;  %2709 = vmatmul.mubr.msk.bf16.vlgmr.msra.gmra.mxu1 %vm529_vm1, %v2540_v44 }
 0x12d   :  { %435 = vrot.lane.b32.xlu1 %v2541_v53, %s3178_s2  ;;  %2713 = vmatpush3.bf16.xpose.msra.mxu1 %v580_v55  ;;  %v337_v55 = vrot.slane %v3272_v29, %v336_v54 }
 0x12e   :  { %2714 = vmatprep.mubr.msk.bf16.mxu1 %vm3177_vm0, %v3176_v0  ;;  %2718 = vmatprep.subr.bf16.mxu1 %v3176_v0 }
 0x130   :  { %473 = vrot.lane.b32.xlu0 %v2543_v50, %s3179_s4 }
 0x131   :  { %437 = vrot.lane.b32.xlu1 %v2540_v44, %s3179_s4 }
 0x134   :  { %475 = vrot.lane.b32.xlu0 %v3279_v40, %s3180_s19  ;;  %2715 = vmatmul.mubr.msk.bf16.vlgmr.msra.gmra.mxu1 %vm529_vm1, %v2541_v53 }
 0x135   :  { %439 = vrot.lane.b32.xlu1 %v2541_v53, %s3179_s4  ;;  %2720 = vmatprep.mubr.msk.bf16.mxu1 %vm3177_vm0, %v3176_v0 }
 0x138   :  { %477 = vrot.lane.b32.xlu0 %v2543_v50, %s3180_s19 }
 0x139   :  { %441 = vrot.lane.b32.xlu1 %v2540_v44, %s3180_s19 }
 0x13c   :  { %479 = vrot.lane.b32.xlu0 %v3279_v40, %s3171_s28 }
 0x13d   :  { %443 = vrot.lane.b32.xlu1 %v2541_v53, %s3180_s19 }
 0x140   :  { %445 = vrot.lane.b32.xlu0 %v2540_v44, %s3171_s28  ;;  %v420_v45 = vpop.f32.mrf.mxu0 }
 0x141   :  { %481 = vrot.lane.b32.xlu1 %v2543_v50, %s3171_s28  ;;  %v421_v56 = vadd.f32 %v420_v45, %v337_v55 }
 0x142   :  { %v2704_v47 = vpop.f32.mrf.mxu0 }
 0x143   :  { %v3413_v58 = vpack.c.bf16 %v421_v56, %v421_v56 }
 0x144   :  { %483 = vrot.lane.b32.xlu0 %v3279_v40, %s3181_s20 }
 0x145   :  { %447 = vrot.lane.b32.xlu1 %v2541_v53, %s3171_s28 }
 0x148   :  { %449 = vrot.lane.b32.xlu0 %v2540_v44, %s3181_s20 }
 0x149   :  { %485 = vrot.lane.b32.xlu1 %v2543_v50, %s3181_s20 }
 0x14c   :  { %487 = vrot.lane.b32.xlu0 %v3279_v40, %s3182_s21 }
 0x14d   :  { %451 = vrot.lane.b32.xlu1 %v2541_v53, %s3181_s20 }
 0x150   :  { %453 = vrot.lane.b32.xlu0 %v2540_v44, %s3182_s21 }
 0x151   :  { %489 = vrot.lane.b32.xlu1 %v2543_v50, %s3182_s21 }
 0x154   :  { %491 = vrot.lane.b32.xlu0 %v3279_v40, %s3183_s22 }
 0x155   :  { %455 = vrot.lane.b32.xlu1 %v2541_v53, %s3182_s21 }
 0x158   :  { %457 = vrot.lane.b32.xlu0 %v2540_v44, %s3183_s22 }
 0x159   :  { %493 = vrot.lane.b32.xlu1 %v2543_v50, %s3183_s22  ;;  %v423_v50 = vpop.f32.mrf.mxu0 }
 0x15a   :  { %v424_v57 = vadd.f32 %v423_v50, %v337_v55 }
 0x15b   :  { %v2705_v52 = vpop.f32.mrf.mxu0 }
 0x15d   :  { %459 = vrot.lane.b32.xlu1 %v2541_v53, %s3183_s22 }
 0x196   :  { %v468_v59 = vpop.permute.xlu0 %467 }
 0x197   :  { %v626_v60 = vsel %vm529_vm1, %v468_v59, 0  ;;  %v3415_v59 = vpack.c.bf16 %v424_v57, %v424_v57 }
 0x198   :  { %2719 = vmatpush3.bf16.xpose.msra.mxu1 %v626_v60  ;;  %v1464_v60 = vsel %vm1462_vm3, %v3413_v58, 0 }
 0x199   :  { %2724 = vmatprep.subr.bf16.mxu1 %v3176_v0 }
 0x19a   :  { %v470_v61 = vpop.permute.xlu1 %469  ;;  %v434_v62 = vpop.permute.xlu0 %433 }
 0x19b   :  { %v672_v1 = vsel %vm529_vm1, %v470_v61, 0  ;;  %v1510_v61 = vsel %vm1462_vm3, %v3415_v59, 0 }
 0x19e   :  { %v472_v63 = vpop.permute.xlu0 %471 }
 0x19f   :  { %v436_v2 = vpop.permute.xlu1 %435  ;;  %2721 = vmatmul.mubr.msk.bf16.vlgmr.msra.gmra.mxu1 %vm529_vm1, %v434_v62  ;;  %v718_v6 = vsel %vm529_vm1, %v472_v63, 0 }
 0x1a0   :  { %2725 = vmatpush3.bf16.xpose.msra.mxu1 %v672_v1  ;;  %2726 = vmatprep.mubr.msk.bf16.mxu1 %vm3177_vm0, %v3176_v0 }
 0x1a1   :  { %2730 = vmatprep.subr.bf16.mxu1 %v3176_v0 }
 0x1a2   :  { %v474_v3 = vpop.permute.xlu0 %473 }
 0x1a3   :  { %v438_v4 = vpop.permute.xlu1 %437  ;;  %v764_v11 = vsel %vm529_vm1, %v474_v3, 0 }
 0x1a6   :  { %v476_v5 = vpop.permute.xlu0 %475 }
 0x1a7   :  { %v440_v7 = vpop.permute.xlu1 %439  ;;  %2727 = vmatmul.mubr.msk.bf16.vlgmr.msra.gmra.mxu1 %vm529_vm1, %v436_v2  ;;  %v810_v16 = vsel %vm529_vm1, %v476_v5, 0 }
 0x1a8   :  { %2731 = vmatpush3.bf16.xpose.msra.mxu1 %v718_v6  ;;  %2732 = vmatprep.mubr.msk.bf16.mxu1 %vm3177_vm0, %v3176_v0 }
 0x1a9   :  { %2736 = vmatprep.subr.bf16.mxu1 %v3176_v0 }
 0x1aa   :  { %v478_v8 = vpop.permute.xlu0 %477 }
 0x1ab   :  { %v442_v9 = vpop.permute.xlu1 %441  ;;  %v856_v22 = vsel %vm529_vm1, %v478_v8, 0 }
 0x1ae   :  { %v480_v10 = vpop.permute.xlu0 %479 }
 0x1af   :  { %v902_v12 = vsel %vm529_vm1, %v480_v10, 0  ;;  %2733 = vmatmul.mubr.msk.bf16.vlgmr.msra.gmra.mxu1 %vm529_vm1, %v438_v4  ;;  %v444_v13 = vpop.permute.xlu1 %443 }
 0x1b0   :  { %2737 = vmatpush3.bf16.xpose.msra.mxu1 %v764_v11  ;;  %2755 = vmatpush3.bf16.xpose.msra.mxu0 %v902_v12 }
 0x1b1   :  { %2738 = vmatprep.mubr.msk.bf16.mxu1 %vm3177_vm0, %v3176_v0  ;;  %2742 = vmatprep.subr.bf16.mxu1 %v3176_v0 }
 0x1b2   :  { %v446_v14 = vpop.permute.xlu0 %445  ;;  %2766 = vmatprep.subr.bf16.mxu0 %v3176_v0 }
 0x1b3   :  { %v482_v18 = vpop.permute.xlu1 %481 }
 0x1b4   :  { %v948_v28 = vsel %vm529_vm1, %v482_v18, 0 }
 0x1b6   :  { %v484_v15 = vpop.permute.xlu0 %483 }
 0x1b7   :  { %v994_v17 = vsel %vm529_vm1, %v484_v15, 0  ;;  %2739 = vmatmul.mubr.msk.bf16.vlgmr.msra.gmra.mxu1 %vm529_vm1, %v440_v7  ;;  %2757 = vmatmul.mubr.msk.bf16.vlgmr.msra.gmra.mxu0 %vm529_vm1, %v446_v14  ;;  %v448_v20 = vpop.permute.xlu1 %447 }
 0x1b8   :  { %2743 = vmatpush3.bf16.xpose.msra.mxu1 %v810_v16  ;;  %2767 = vmatpush3.bf16.xpose.msra.mxu0 %v994_v17 }
 0x1b9   :  { %2768 = vmatprep.mubr.msk.bf16.mxu0 %vm3177_vm0, %v3176_v0  ;;  %2744 = vmatprep.mubr.msk.bf16.mxu1 %vm3177_vm0, %v3176_v0 }
 0x1ba   :  { %v450_v19 = vpop.permute.xlu0 %449  ;;  %2748 = vmatprep.subr.bf16.mxu1 %v3176_v0  ;;  %2778 = vmatprep.subr.bf16.mxu0 %v3176_v0 }
 0x1bb   :  { %v486_v25 = vpop.permute.xlu1 %485 }
 0x1bc   :  { %v1040_v33 = vsel %vm529_vm1, %v486_v25, 0 }
 0x1be   :  { %v488_v21 = vpop.permute.xlu0 %487 }
 0x1bf   :  { %v1086_v23 = vsel %vm529_vm1, %v488_v21, 0  ;;  %2745 = vmatmul.mubr.msk.bf16.vlgmr.msra.gmra.mxu1 %vm529_vm1, %v442_v9  ;;  %2769 = vmatmul.mubr.msk.bf16.vlgmr.msra.gmra.mxu0 %vm529_vm1, %v450_v19  ;;  %v452_v31 = vpop.permute.xlu1 %451 }
 0x1c0   :  { %2749 = vmatpush3.bf16.xpose.msra.mxu1 %v856_v22  ;;  %2779 = vmatpush3.bf16.xpose.msra.mxu0 %v1086_v23 }
 0x1c1   :  { %2780 = vmatprep.mubr.msk.bf16.mxu0 %vm3177_vm0, %v3176_v0  ;;  %2750 = vmatprep.mubr.msk.bf16.mxu1 %vm3177_vm0, %v3176_v0 }
 0x1c2   :  { %v454_v24 = vpop.permute.xlu0 %453  ;;  %2760 = vmatprep.subr.bf16.mxu1 %v3176_v0  ;;  %2790 = vmatprep.subr.bf16.mxu0 %v3176_v0 }
 0x1c3   :  { %v490_v34 = vpop.permute.xlu1 %489 }
 0x1c4   :  { %v1132_v36 = vsel %vm529_vm1, %v490_v34, 0 }
 0x1c6   :  { %v492_v27 = vpop.permute.xlu0 %491 }
 0x1c7   :  { %v1178_v30 = vsel %vm529_vm1, %v492_v27, 0  ;;  %2751 = vmatmul.mubr.msk.bf16.vlgmr.msra.gmra.mxu1 %vm529_vm1, %v444_v13  ;;  %2781 = vmatmul.mubr.msk.bf16.vlgmr.msra.gmra.mxu0 %vm529_vm1, %v454_v24  ;;  %v456_v35 = vpop.permute.xlu1 %455 }
 0x1c8   :  { %2761 = vmatpush3.bf16.xpose.msra.mxu1 %v948_v28  ;;  %2791 = vmatpush3.bf16.xpose.msra.mxu0 %v1178_v30 }
 0x1c9   :  { %2792 = vmatprep.mubr.msk.bf16.mxu0 %vm3177_vm0, %v3176_v0  ;;  %2762 = vmatprep.mubr.msk.bf16.mxu1 %vm3177_vm0, %v3176_v0 }
 0x1ca   :  { %2772 = vmatprep.subr.bf16.mxu1 %v3176_v0  ;;  %2802 = vmatprep.subr.bf16.mxu0 %v3176_v0  ;;  %v458_v32 = vpop.permute.xlu0 %457 }
 0x1cb   :  { %v494_v37 = vpop.permute.xlu1 %493 }
 0x1cc   :  { %v1224_v38 = vsel %vm529_vm1, %v494_v37, 0 }
 0x1cf   :  { %2763 = vmatmul.mubr.msk.bf16.vlgmr.msra.gmra.mxu1 %vm529_vm1, %v448_v20  ;;  %2793 = vmatmul.mubr.msk.bf16.vlgmr.msra.gmra.mxu0 %vm529_vm1, %v458_v32  ;;  %v460_v39 = vpop.permute.xlu1 %459 }
 0x1d0   :  { %2773 = vmatpush3.bf16.xpose.msra.mxu1 %v1040_v33  ;;  %2774 = vmatprep.mubr.msk.bf16.mxu1 %vm3177_vm0, %v3176_v0 }
 0x1d1   :  { %2784 = vmatprep.subr.bf16.mxu1 %v3176_v0  ;;  %2804 = vmatprep.mubr.msk.bf16.mxu0 %vm3177_vm0, %v3176_v0 }
 0x1d2   :  { %2803 = vmatpush3.bf16.msra.mxu0 %v1464_v60 }
 0x1d3   :  { %2814 = vmatprep.subr.bf16.mxu0 %v3176_v0 }
 0x1d7   :  { %2775 = vmatmul.mubr.msk.bf16.vlgmr.msra.gmra.mxu1 %vm529_vm1, %v452_v31 }
 0x1d8   :  { %2785 = vmatpush3.bf16.xpose.msra.mxu1 %v1132_v36  ;;  %2786 = vmatprep.mubr.msk.bf16.mxu1 %vm3177_vm0, %v3176_v0 }
 0x1d9   :  { %2796 = vmatprep.subr.bf16.mxu1 %v3176_v0 }
 0x1df   :  { %2787 = vmatmul.mubr.msk.bf16.vlgmr.msra.gmra.mxu1 %vm529_vm1, %v456_v35 }
 0x1e0   :  { %2797 = vmatpush3.bf16.xpose.msra.mxu1 %v1224_v38  ;;  %2798 = vmatprep.mubr.msk.bf16.mxu1 %vm3177_vm0, %v3176_v0 }
 0x1e1   :  { %2808 = vmatprep.subr.bf16.mxu1 %v3176_v0 }
 0x1e7   :  { %2799 = vmatmul.mubr.msk.bf16.vlgmr.msra.gmra.mxu1 %vm529_vm1, %v460_v39 }
 0x1e8   :  { %2810 = vmatprep.mubr.msk.bf16.mxu1 %vm3177_vm0, %v3176_v0  ;;  %2809 = vmatpush3.bf16.msra.mxu1 %v1510_v61 }
 0x1e9   :  { %2820 = vmatprep.subr.bf16.mxu1 %v3176_v0 }
 0x1ec   :  { %v3403_v40 = vpop.f32.mrf.mxu1 }
 0x1ed   :  { %v1267_v41 = vsel %vm1266_vm2, %v3403_v40, -inf }
 0x1ee   :  { %1268 = vmax.xlane.f32.xlu0 %v1267_v41  ;;  %v2710_v42 = vpop.f32.mrf.mxu1 }
 0x1f0   :  { %v573_v43 = vpop.f32.mrf.mxu1 }
 0x1f2   :  { %v2711_v44 = vpop.f32.mrf.mxu1 }
 0x1f4   :  { %v3407_v46 = vpop.f32.mrf.mxu1 }
 0x1f5   :  { %v1270_v48 = vsel %vm1266_vm2, %v3407_v46, -inf }
 0x1f6   :  { %1271 = vmax.xlane.f32.xlu1 %v1270_v48  ;;  %v2716_v49 = vpop.f32.mrf.mxu1 }
 0x1f8   :  { %v619_v51 = vpop.f32.mrf.mxu1 }
 0x1fa   :  { %v2717_v53 = vpop.f32.mrf.mxu1 }
 0x25f   :  { %v3423_v29 = vpop.f32.mrf.mxu1 }
 0x260   :  { %v1273_v62 = vsel %vm1266_vm2, %v3423_v29, -inf }
 0x261   :  { %1274 = vmax.xlane.f32.xlu0 %v1273_v62  ;;  %v2722_v63 = vpop.f32.mrf.mxu1 }
 0x263   :  { %v665_v1 = vpop.f32.mrf.mxu1 }
 0x265   :  { %v2723_v2 = vpop.f32.mrf.mxu1 }
 0x267   :  { %v3427_v3 = vpop.f32.mrf.mxu1 }
 0x268   :  { %v1276_v4 = vsel %vm1266_vm2, %v3427_v3, -inf }
 0x269   :  { %1277 = vmax.xlane.f32.xlu0 %v1276_v4  ;;  %v2728_v5 = vpop.f32.mrf.mxu1 }
 0x26b   :  { %v711_v6 = vpop.f32.mrf.mxu1 }
 0x26d   :  { %v2729_v7 = vpop.f32.mrf.mxu1 }
 0x26f   :  { %v3431_v8 = vpop.f32.mrf.mxu1 }
 0x270   :  { %v1279_v32 = vsel %vm1266_vm2, %v3431_v8, -inf }
 0x271   :  { %v2734_v9 = vpop.f32.mrf.mxu1 }
 0x273   :  { %v757_v10 = vpop.f32.mrf.mxu1 }
 0x275   :  { %v2735_v11 = vpop.f32.mrf.mxu1 }
 0x277   :  { %v3433_v12 = vpop.f32.mrf.mxu1  ;;  %v3435_v13 = vpop.f32.mrf.mxu0 }
 0x278   :  { %v1282_v14 = vsel %vm1266_vm2, %v3433_v12, -inf  ;;  %v1291_v16 = vsel %vm1266_vm2, %v3435_v13, -inf  ;;  %v1269_v11 = vpop.xlane.xlu0 %1268 }
 0x279   :  { %1283 = vmax.xlane.f32.xlu0 %v1282_v14  ;;  %v2740_v15 = vpop.f32.mrf.mxu1  ;;  %1292 = vmax.xlane.f32.xlu1 %v1291_v16  ;;  %v2758_v17 = vpop.f32.mrf.mxu0  ;;  %v1315_v16 = vsub.f32 %v3403_v40, %v1269_v11 }
 0x27b   :  { %v803_v18 = vpop.f32.mrf.mxu1  ;;  %v941_v19 = vpop.f32.mrf.mxu0 }
 0x27c   :  { %v1331_v18 = vmul.f32 1.442695, %v1315_v16 }
 0x27d   :  { %v2741_v20 = vpop.f32.mrf.mxu1  ;;  %v2759_v21 = vpop.f32.mrf.mxu0 }
 0x27f   :  { %v3441_v22 = vpop.f32.mrf.mxu1  ;;  %v3443_v23 = vpop.f32.mrf.mxu0 }
 0x280   :  { %v1297_v25 = vsel %vm1266_vm2, %v3443_v23, -inf  ;;  %v1285_v53 = vsel %vm1266_vm2, %v3441_v22, -inf  ;;  %v1272_v63 = vpop.xlane.xlu1 %1271 }
 0x281   :  { %v2746_v24 = vpop.f32.mrf.mxu1  ;;  %1298 = vmax.xlane.f32.xlu1 %v1297_v25  ;;  %v2770_v27 = vpop.f32.mrf.mxu0  ;;  %v1316_v2 = vsub.f32 %v3407_v46, %v1272_v63 }
 0x283   :  { %v849_v28 = vpop.f32.mrf.mxu1  ;;  %v1033_v30 = vpop.f32.mrf.mxu0  ;;  %v1333_v6 = vmul.f32 1.442695, %v1316_v2 }
 0x285   :  { %v2747_v31 = vpop.f32.mrf.mxu1  ;;  %1280 = vmax.xlane.f32.xlu1 %v1279_v32  ;;  %v2771_v33 = vpop.f32.mrf.mxu0  ;;  %2968 = vpow2.f32 %v1333_v6 }
 0x286   :  { %2970 = vpow2.f32 %v1331_v18 }
 0x287   :  { %v3449_v34 = vpop.f32.mrf.mxu1  ;;  %v3451_v35 = vpop.f32.mrf.mxu0 }
 0x288   :  { %v1303_v37 = vsel %vm1266_vm2, %v3451_v35, -inf  ;;  %v1288_v46 = vsel %vm1266_vm2, %v3449_v34, -inf }
 0x289   :  { %v2752_v36 = vpop.f32.mrf.mxu1  ;;  %1304 = vmax.xlane.f32.xlu1 %v1303_v37  ;;  %v2782_v38 = vpop.f32.mrf.mxu0 }
 0x28b   :  { %v895_v39 = vpop.f32.mrf.mxu1  ;;  %v1125_v41 = vpop.f32.mrf.mxu0 }
 0x28d   :  { %v2753_v42 = vpop.f32.mrf.mxu1  ;;  %v2783_v43 = vpop.f32.mrf.mxu0 }
 0x28f   :  { %v3455_v44 = vpop.f32.mrf.mxu1  ;;  %503 = vrot.lane.b32.xlu0 %v3415_v59, %s3178_s2  ;;  %v3459_v45 = vpop.f32.mrf.mxu0 }
 0x290   :  { %v1309_v48 = vsel %vm1266_vm2, %v3459_v45, -inf  ;;  %v1294_v14 = vsel %vm1266_vm2, %v3455_v44, -inf }
 0x291   :  { %v2764_v47 = vpop.f32.mrf.mxu1  ;;  %1310 = vmax.xlane.f32.xlu1 %v1309_v48  ;;  %v2794_v49 = vpop.f32.mrf.mxu0 }
 0x292   :  { %v3486_v15 = vpop.eup %2968 }
 0x293   :  { %v987_v50 = vpop.f32.mrf.mxu1  ;;  %507 = vrot.lane.b32.xlu0 %v3415_v59, %s3179_s4  ;;  %v1217_v51 = vpop.f32.mrf.mxu0  ;;  %v1366_v17 = vsel %vm1266_vm2, %v3486_v15, 0.0 }
 0x294   :  { %v3497_v40 = vpop.eup %2970 }
 0x295   :  { %v2765_v52 = vpop.f32.mrf.mxu1  ;;  %1286 = vmax.xlane.f32.xlu1 %v1285_v53  ;;  %v2795_v54 = vpop.f32.mrf.mxu0  ;;  %v1363_v24 = vsel %vm1266_vm2, %v3497_v40, 0.0 }
 0x297   :  { %v3467_v55 = vpop.f32.mrf.mxu1  ;;  %511 = vrot.lane.b32.xlu0 %v3415_v59, %s3180_s19 }
 0x298   :  { %v1300_v19 = vsel %vm1266_vm2, %v3467_v55, -inf }
 0x299   :  { %v2776_v56 = vpop.f32.mrf.mxu1 }
 0x29b   :  { %v1079_v57 = vpop.f32.mrf.mxu1 }
 0x29d   :  { %v2777_v60 = vpop.f32.mrf.mxu1 }
 0x29f   :  { %v3471_v61 = vpop.f32.mrf.mxu1 }
 0x2a0   :  { %v1306_v20 = vsel %vm1266_vm2, %v3471_v61, -inf }
 0x2a1   :  { %v2788_v62 = vpop.f32.mrf.mxu1 }
 0x2a3   :  { %v1171_v1 = vpop.f32.mrf.mxu1 }
 0x2a5   :  { %v2789_v4 = vpop.f32.mrf.mxu1 }
 0x2a6   :  { %501 = vrot.lane.b32.xlu1 %v3413_v58, %s3178_s2 }
 0x2a7   :  { %v3476_v5 = vpop.f32.mrf.mxu1 }
 0x2a8   :  { %v1312_v21 = vsel %vm1266_vm2, %v3476_v5, -inf }
 0x2a9   :  { %v2800_v7 = vpop.f32.mrf.mxu1 }
 0x2aa   :  { %505 = vrot.lane.b32.xlu1 %v3413_v58, %s3179_s4 }
 0x2ab   :  { %v1263_v9 = vpop.f32.mrf.mxu1 }
 0x2ad   :  { %v2801_v10 = vpop.f32.mrf.mxu1 }
 0x2ae   :  { %509 = vrot.lane.b32.xlu1 %v3413_v58, %s3180_s19 }
 0x2b6   :  { %1289 = vmax.xlane.f32.xlu0 %v1288_v46 }
 0x2ba   :  { %1295 = vmax.xlane.f32.xlu0 %v1294_v14 }
 0x2be   :  { %1367 = vadd.xlane.f32.xlu0 %v1366_v17 }
 0x2c2   :  { %1301 = vmax.xlane.f32.xlu0 %v1300_v19 }
 0x2c6   :  { %1307 = vmax.xlane.f32.xlu0 %v1306_v20 }
 0x2ca   :  { %1313 = vmax.xlane.f32.xlu0 %v1312_v21 }
 0x2d2   :  { %1364 = vadd.xlane.f32.xlu1 %v1363_v24 }
 0x2ea   :  { %v1275_v25 = vpop.xlane.xlu0 %1274 }
 0x2eb   :  { %v1317_v27 = vsub.f32 %v3423_v29, %v1275_v25 }
 0x2ed   :  { %v1335_v28 = vmul.f32 1.442695, %v1317_v27 }
 0x2ef   :  { %2972 = vpow2.f32 %v1335_v28 }
 0x2f2   :  { %v1278_v30 = vpop.xlane.xlu0 %1277 }
 0x2f3   :  { %v1318_v31 = vsub.f32 %v3427_v3, %v1278_v30 }
 0x2f5   :  { %v1337_v32 = vmul.f32 1.442695, %v1318_v31 }
 0x2f7   :  { %2974 = vpow2.f32 %v1337_v32 }
 0x2fc   :  { %v3503_v33 = vpop.eup %2972 }
 0x2fd   :  { %v1369_v36 = vsel %vm1266_vm2, %v3503_v33, 0.0 }
 0x2fe   :  { %1370 = vadd.xlane.f32.xlu1 %v1369_v36 }
 0x302   :  { %v1284_v37 = vpop.xlane.xlu0 %1283  ;;  %v1293_v39 = vpop.xlane.xlu1 %1292 }
 0x303   :  { %v1320_v38 = vsub.f32 %v3433_v12, %v1284_v37  ;;  %v1323_v29 = vsub.f32 %v3435_v13, %v1293_v39 }
 0x304   :  { %v3508_v41 = vpop.eup %2974 }
 0x305   :  { %v1341_v42 = vmul.f32 1.442695, %v1320_v38  ;;  %v1372_v3 = vsel %vm1266_vm2, %v3508_v41, 0.0  ;;  %v1347_v43 = vmul.f32 1.442695, %v1323_v29 }
 0x306   :  { %1373 = vadd.xlane.f32.xlu0 %v1372_v3  ;;  %v504_v46 = vpop.permute.xlu0 %503 }
 0x307   :  { %2976 = vpow2.f32 %v1341_v42  ;;  %v1602_v3 = vsel %vm1462_vm3, %v504_v46, 0 }
 0x308   :  { %2978 = vpow2.f32 %v1347_v43 }
 0x30a   :  { %v1299_v47 = vpop.xlane.xlu1 %1298  ;;  %v3548_v16 = vpop.permute.xlu0 %507 }
 0x30b   :  { %v1325_v48 = vsub.f32 %v3443_v23, %v1299_v47 }
 0x30d   :  { %v1351_v49 = vmul.f32 1.442695, %v1325_v48 }
 0x30e   :  { %v1281_v50 = vpop.xlane.xlu1 %1280  ;;  %v3550_v17 = vpop.permute.xlu0 %511 }
 0x30f   :  { %2980 = vpow2.f32 %v1351_v49  ;;  %v1319_v12 = vsub.f32 %v3431_v8, %v1281_v50 }
 0x311   :  { %v1339_v51 = vmul.f32 1.442695, %v1319_v12 }
 0x312   :  { %v1305_v52 = vpop.xlane.xlu1 %1304 }
 0x313   :  { %2982 = vpow2.f32 %v1339_v51  ;;  %v1327_v13 = vsub.f32 %v3451_v35, %v1305_v52 }
 0x314   :  { %v3515_v53 = vpop.eup %2976 }
 0x315   :  { %v3518_v54 = vpop.eup %2978  ;;  %v1378_v56 = vsel %vm1266_vm2, %v3515_v53, 0.0  ;;  %v1355_v57 = vmul.f32 1.442695, %v1327_v13 }
 0x316   :  { %1379 = vadd.xlane.f32.xlu0 %v1378_v56  ;;  %v1387_v23 = vsel %vm1266_vm2, %v3518_v54, 0.0 }
 0x317   :  { %1388 = vadd.xlane.f32.xlu1 %v1387_v23  ;;  %2984 = vpow2.f32 %v1355_v57 }
 0x31a   :  { %v1311_v8 = vpop.xlane.xlu1 %1310 }
 0x31b   :  { %v1329_v60 = vsub.f32 %v3459_v45, %v1311_v8 }
 0x31c   :  { %v3525_v62 = vpop.eup %2980 }
 0x31d   :  { %v1359_v63 = vmul.f32 1.442695, %v1329_v60  ;;  %v1393_v35 = vsel %vm1266_vm2, %v3525_v62, 0.0 }
 0x31e   :  { %1394 = vadd.xlane.f32.xlu1 %v1393_v35  ;;  %v1287_v1 = vpop.xlane.xlu1 %1286 }
 0x31f   :  { %2986 = vpow2.f32 %v1359_v63  ;;  %v1321_v2 = vsub.f32 %v3441_v22, %v1287_v1 }
 0x320   :  { %v3530_v4 = vpop.eup %2982 }
 0x321   :  { %v1343_v6 = vmul.f32 1.442695, %v1321_v2  ;;  %v1375_v7 = vsel %vm1266_vm2, %v3530_v4, 0.0 }
 0x322   :  { %1376 = vadd.xlane.f32.xlu1 %v1375_v7  ;;  %v502_v30 = vpop.permute.xlu1 %501 }
 0x323   :  { %2988 = vpow2.f32 %v1343_v6  ;;  %v1556_v50 = vsel %vm1462_vm3, %v502_v30, 0 }
 0x324   :  { %v3534_v45 = vpop.eup %2984 }
 0x325   :  { %v1399_v9 = vsel %vm1266_vm2, %v3534_v45, 0.0 }
 0x326   :  { %1400 = vadd.xlane.f32.xlu1 %v1399_v9  ;;  %v506_v32 = vpop.permute.xlu1 %505 }
 0x327   :  { %v1648_v2 = vsel %vm1462_vm3, %v506_v32, 0 }
 0x32a   :  { %v3574_v29 = vpop.permute.xlu1 %509 }
 0x32c   :  { %515 = vrot.lane.b32.xlu0 %v3415_v59, %s3171_s28  ;;  %v3540_v10 = vpop.eup %2986 }
 0x32d   :  { %v1405_v22 = vsel %vm1266_vm2, %v3540_v10, 0.0 }
 0x32e   :  { %1406 = vadd.xlane.f32.xlu1 %v1405_v22  ;;  %v1694_v22 = vsel %vm1462_vm3, %v3548_v16, 0  ;;  %v1786_v16 = vsel %vm1462_vm3, %v3550_v17, 0  ;;  %v1740_v17 = vsel %vm1462_vm3, %v3574_v29, 0 }
 0x330   :  { %v3544_v11 = vpop.eup %2988 }
 0x331   :  { %v1381_v14 = vsel %vm1266_vm2, %v3544_v11, 0.0 }
 0x332   :  { %1382 = vadd.xlane.f32.xlu1 %v1381_v14 }
 0x33f   :  { %v1290_v18 = vpop.xlane.xlu0 %1289 }
 0x340   :  { %v1322_v19 = vsub.f32 %v3449_v34, %v1290_v18 }
 0x342   :  { %v1345_v20 = vmul.f32 1.442695, %v1322_v19 }
 0x343   :  { %v1296_v21 = vpop.xlane.xlu0 %1295  ;;  %513 = vrot.lane.b32.xlu1 %v3413_v58, %s3171_s28 }
 0x344   :  { %2990 = vpow2.f32 %v1345_v20  ;;  %v1324_v24 = vsub.f32 %v3455_v44, %v1296_v21 }
 0x346   :  { %v1349_v25 = vmul.f32 1.442695, %v1324_v24 }
 0x347   :  { %v1368_v27 = vpop.xlane.xlu0 %1367  ;;  %517 = vrot.lane.b32.xlu1 %v3413_v58, %s3181_s20 }
 0x348   :  { %2992 = vpow2.f32 %v1349_v25 }
 0x349   :  { %2994 = vrcp.f32 %v1368_v27 }
 0x34b   :  { %v1302_v28 = vpop.xlane.xlu0 %1301  ;;  %519 = vrot.lane.b32.xlu1 %v3415_v59, %s3181_s20 }
 0x34c   :  { %v1326_v31 = vsub.f32 %v3467_v55, %v1302_v28 }
 0x34e   :  { %v1353_v34 = vmul.f32 1.442695, %v1326_v31 }
 0x34f   :  { %523 = vrot.lane.b32.xlu1 %v3415_v59, %s3182_s21  ;;  %v1308_v12 = vpop.xlane.xlu0 %1307 }
 0x350   :  { %2996 = vpow2.f32 %v1353_v34  ;;  %v1328_v51 = vsub.f32 %v3471_v61, %v1308_v12 }
 0x351   :  { %v3563_v44 = vpop.eup %2990 }
 0x352   :  { %v1384_v36 = vsel %vm1266_vm2, %v3563_v44, 0.0  ;;  %v1357_v13 = vmul.f32 1.442695, %v1328_v51 }
 0x353   :  { %1385 = vadd.xlane.f32.xlu0 %v1384_v36  ;;  %527 = vrot.lane.b32.xlu1 %v3415_v59, %s3183_s22  ;;  %v1314_v52 = vpop.xlane.xlu0 %1313 }
 0x355   :  { %v3569_v37 = vpop.eup %2992 }
 0x356   :  { %v2995_v55 = vpop.eup %2994  ;;  %v1390_v38 = vsel %vm1266_vm2, %v3569_v37, 0.0 }
 0x357   :  { %1391 = vadd.xlane.f32.xlu0 %v1390_v38  ;;  %v1428_v39 = vmul.f32 %v2995_v55, %v3486_v15 }
 0x359   :  { %v1444_v42 = vpack.c.bf16 %v1428_v39, %v1428_v39 }
 0x35b   :  { %2811 = vmatmul.mubr.msk.bf16.vlgmr.msra.gmra.mxu1 %vm1266_vm2, %v1444_v42  ;;  %v1365_v43 = vpop.xlane.xlu1 %1364 }
 0x35c   :  { %2821 = vmatpush3.bf16.msra.mxu1 %v1602_v3  ;;  %2822 = vmatprep.mubr.msk.bf16.mxu1 %vm3177_vm0, %v3176_v0  ;;  %2998 = vrcp.f32 %v1365_v43 }
 0x35d   :  { %v3580_v59 = vpop.eup %2996  ;;  %2832 = vmatprep.subr.bf16.mxu1 %v3176_v0  ;;  %3000 = vpow2.f32 %v1357_v13 }
 0x35e   :  { %v1396_v15 = vsel %vm1266_vm2, %v3580_v59, 0.0 }
 0x35f   :  { %1397 = vadd.xlane.f32.xlu0 %v1396_v15 }
 0x369   :  { %v2999_v47 = vpop.eup %2998 }
 0x36a   :  { %v1427_v48 = vmul.f32 %v2999_v47, %v3497_v40  ;;  %v1330_v40 = vsub.f32 %v3476_v5, %v1314_v52  ;;  %v3595_v8 = vpop.eup %3000 }
 0x36b   :  { %v1402_v60 = vsel %vm1266_vm2, %v3595_v8, 0.0 }
 0x36c   :  { %v1443_v49 = vpack.c.bf16 %v1427_v48, %v1427_v48  ;;  %v1361_v56 = vmul.f32 1.442695, %v1330_v40 }
 0x36e   :  { %2805 = vmatmul.mubr.msk.bf16.vlgmr.msra.gmra.mxu0 %vm1266_vm2, %v1443_v49  ;;  %3002 = vpow2.f32 %v1361_v56 }
 0x36f   :  { %2815 = vmatpush3.bf16.msra.mxu0 %v1556_v50  ;;  %2816 = vmatprep.mubr.msk.bf16.mxu0 %vm3177_vm0, %v3176_v0 }
 0x370   :  { %2826 = vmatprep.subr.bf16.mxu0 %v3176_v0 }
 0x375   :  { %521 = vrot.lane.b32.xlu0 %v3413_v58, %s3182_s21 }
 0x37b   :  { %v3599_v63 = vpop.eup %3002 }
 0x37c   :  { %v1408_v5 = vsel %vm1266_vm2, %v3599_v63, 0.0 }
 0x387   :  { %v1371_v57 = vpop.xlane.xlu1 %1370 }
 0x388   :  { %3004 = vrcp.f32 %v1371_v57 }
 0x38f   :  { %v1374_v23 = vpop.xlane.xlu0 %1373 }
 0x390   :  { %3006 = vrcp.f32 %v1374_v23 }
 0x394   :  { %1403 = vadd.xlane.f32.xlu0 %v1402_v60 }
 0x395   :  { %v3005_v61 = vpop.eup %3004 }
 0x396   :  { %v1429_v35 = vmul.f32 %v3005_v61, %v3503_v33 }
 0x398   :  { %1409 = vadd.xlane.f32.xlu0 %v1408_v5  ;;  %v1445_v1 = vpack.c.bf16 %v1429_v35, %v1429_v35 }
 0x39a   :  { %2817 = vmatmul.mubr.msk.bf16.vlgmr.msra.gmra.mxu0 %vm1266_vm2, %v1445_v1 }
 0x39b   :  { %2827 = vmatpush3.bf16.msra.mxu0 %v1648_v2  ;;  %2828 = vmatprep.mubr.msk.bf16.mxu0 %vm3177_vm0, %v3176_v0 }
 0x39c   :  { %2838 = vmatprep.subr.bf16.mxu0 %v3176_v0 }
 0x39d   :  { %v3007_v6 = vpop.eup %3006 }
 0x39e   :  { %v1430_v7 = vmul.f32 %v3007_v6, %v3508_v41 }
 0x39f   :  { %v1380_v9 = vpop.xlane.xlu0 %1379 }
 0x3a0   :  { %3008 = vrcp.f32 %v1380_v9  ;;  %v1446_v33 = vpack.c.bf16 %v1430_v7, %v1430_v7  ;;  %v1389_v46 = vpop.xlane.xlu1 %1388 }
 0x3a2   :  { %2823 = vmatmul.mubr.msk.bf16.vlgmr.msra.gmra.mxu1 %vm1266_vm2, %v1446_v33 }
 0x3a3   :  { %2833 = vmatpush3.bf16.msra.mxu1 %v1694_v22  ;;  %2834 = vmatprep.mubr.msk.bf16.mxu1 %vm3177_vm0, %v3176_v0  ;;  %v516_v29 = vpop.permute.xlu0 %515 }
 0x3a4   :  { %2844 = vmatprep.subr.bf16.mxu1 %v3176_v0  ;;  %v1878_v13 = vsel %vm1462_vm3, %v516_v29, 0 }
 0x3a7   :  { %v1395_v14 = vpop.xlane.xlu1 %1394 }
 0x3ab   :  { %v1377_v18 = vpop.xlane.xlu1 %1376 }
 0x3ac   :  { %3010 = vrcp.f32 %v1377_v18 }
 0x3ad   :  { %v3009_v19 = vpop.eup %3008 }
 0x3ae   :  { %525 = vrot.lane.b32.xlu0 %v3413_v58, %s3183_s22  ;;  %v1432_v41 = vmul.f32 %v3009_v19, %v3515_v53 }
 0x3af   :  { %v1401_v21 = vpop.xlane.xlu1 %1400 }
 0x3b0   :  { %v1448_v20 = vpack.c.bf16 %v1432_v41, %v1432_v41 }
 0x3b2   :  { %2835 = vmatmul.mubr.msk.bf16.vlgmr.msra.gmra.mxu1 %vm1266_vm2, %v1448_v20 }
 0x3b3   :  { %2845 = vmatpush3.bf16.msra.mxu1 %v1786_v16  ;;  %2846 = vmatprep.mubr.msk.bf16.mxu1 %vm3177_vm0, %v3176_v0 }
 0x3b4   :  { %2856 = vmatprep.subr.bf16.mxu1 %v3176_v0 }
 0x3b7   :  { %v3625_v24 = vpop.xlane.xlu1 %1406 }
 0x3b9   :  { %v3011_v25 = vpop.eup %3010 }
 0x3ba   :  { %v1431_v58 = vmul.f32 %v3011_v25, %v3530_v4 }
 0x3bb   :  { %v1383_v27 = vpop.xlane.xlu1 %1382 }
 0x3bc   :  { %3012 = vrcp.f32 %v1383_v27  ;;  %v1447_v53 = vpack.c.bf16 %v1431_v58, %v1431_v58 }
 0x3bd   :  { %3014 = vrcp.f32 %v1389_v46 }
 0x3be   :  { %2829 = vmatmul.mubr.msk.bf16.vlgmr.msra.gmra.mxu0 %vm1266_vm2, %v1447_v53  ;;  %3016 = vrcp.f32 %v1395_v14 }
 0x3bf   :  { %2839 = vmatpush3.bf16.msra.mxu0 %v1740_v17  ;;  %2840 = vmatprep.mubr.msk.bf16.mxu0 %vm3177_vm0, %v3176_v0  ;;  %v514_v4 = vpop.permute.xlu1 %513  ;;  %3018 = vrcp.f32 %v1401_v21 }
 0x3c0   :  { %2850 = vmatprep.subr.bf16.mxu0 %v3176_v0  ;;  %v1832_v32 = vsel %vm1462_vm3, %v514_v4, 0 }
 0x3c3   :  { %v518_v55 = vpop.permute.xlu1 %517 }
 0x3c9   :  { %v3013_v28 = vpop.eup %3012 }
 0x3ca   :  { %v1433_v30 = vmul.f32 %v3013_v28, %v3544_v11  ;;  %v3015_v34 = vpop.eup %3014  ;;  %v1924_v11 = vsel %vm1462_vm3, %v518_v55, 0 }
 0x3cb   :  { %v1435_v36 = vmul.f32 %v3015_v34, %v3518_v54  ;;  %v3017_v39 = vpop.eup %3016 }
 0x3cc   :  { %v1449_v31 = vpack.c.bf16 %v1433_v30, %v1433_v30  ;;  %v1437_v42 = vmul.f32 %v3017_v39, %v3525_v62  ;;  %v3019_v15 = vpop.eup %3018 }
 0x3cd   :  { %v1451_v38 = vpack.c.bf16 %v1435_v36, %v1435_v36  ;;  %v1439_v62 = vmul.f32 %v3019_v15, %v3534_v45 }
 0x3ce   :  { %2841 = vmatmul.mubr.msk.bf16.vlgmr.msra.gmra.mxu0 %vm1266_vm2, %v1449_v31  ;;  %v1453_v54 = vpack.c.bf16 %v1437_v42, %v1437_v42 }
 0x3cf   :  { %2851 = vmatpush3.bf16.msra.mxu0 %v1832_v32  ;;  %2852 = vmatprep.mubr.msk.bf16.mxu0 %vm3177_vm0, %v3176_v0  ;;  %v1455_v40 = vpack.c.bf16 %v1439_v62, %v1439_v62 }
 0x3d0   :  { %2862 = vmatprep.subr.bf16.mxu0 %v3176_v0 }
 0x3d6   :  { %2853 = vmatmul.mubr.msk.bf16.vlgmr.msra.gmra.mxu0 %vm1266_vm2, %v1451_v38 }
 0x3d7   :  { %2863 = vmatpush3.bf16.msra.mxu0 %v1924_v11  ;;  %2864 = vmatprep.mubr.msk.bf16.mxu0 %vm3177_vm0, %v3176_v0 }
 0x3d8   :  { %2874 = vmatprep.subr.bf16.mxu0 %v3176_v0 }
 0x3dc   :  { %v1386_v3 = vpop.xlane.xlu0 %1385 }
 0x3dd   :  { %3020 = vrcp.f32 %v1386_v3 }
 0x3de   :  { %2865 = vmatmul.mubr.msk.bf16.vlgmr.msra.gmra.mxu0 %vm1266_vm2, %v1453_v54 }
 0x3df   :  { %2876 = vmatprep.mubr.msk.bf16.mxu0 %vm3177_vm0, %v3176_v0 }
 0x3e0   :  { %v1392_v43 = vpop.xlane.xlu0 %1391 }
 0x3e1   :  { %3022 = vrcp.f32 %v1392_v43 }
 0x3e8   :  { %v1398_v47 = vpop.xlane.xlu0 %1397 }
 0x3e9   :  { %3024 = vrcp.f32 %v1398_v47 }
 0x3ea   :  { %v3021_v48 = vpop.eup %3020  ;;  %3026 = vrcp.f32 %v3625_v24 }
 0x3eb   :  { %v1434_v49 = vmul.f32 %v3021_v48, %v3563_v44  ;;  %v520_v44 = vpop.permute.xlu1 %519 }
 0x3ec   :  { %v522_v50 = vpop.permute.xlu0 %521  ;;  %v1970_v23 = vsel %vm1462_vm3, %v520_v44, 0 }
 0x3ed   :  { %v2016_v12 = vsel %vm1462_vm3, %v522_v50, 0  ;;  %v1450_v51 = vpack.c.bf16 %v1434_v49, %v1434_v49 }
 0x3ee   :  { %v3023_v52 = vpop.eup %3022  ;;  %2875 = vmatpush3.bf16.msra.mxu0 %v2016_v12 }
 0x3ef   :  { %2847 = vmatmul.mubr.msk.bf16.vlgmr.msra.gmra.mxu1 %vm1266_vm2, %v1450_v51  ;;  %2886 = vmatprep.subr.bf16.mxu0 %v3176_v0  ;;  %v1436_v45 = vmul.f32 %v3023_v52, %v3569_v37  ;;  %v524_v61 = vpop.permute.xlu1 %523 }
 0x3f0   :  { %2857 = vmatpush3.bf16.msra.mxu1 %v1878_v13  ;;  %2858 = vmatprep.mubr.msk.bf16.mxu1 %vm3177_vm0, %v3176_v0  ;;  %v2062_v35 = vsel %vm1462_vm3, %v524_v61, 0 }
 0x3f1   :  { %2877 = vmatmul.mubr.msk.bf16.vlgmr.msra.gmra.mxu0 %vm1266_vm2, %v1455_v40  ;;  %2868 = vmatprep.subr.bf16.mxu1 %v3176_v0  ;;  %v1452_v56 = vpack.c.bf16 %v1436_v45, %v1436_v45 }
 0x3f2   :  { %2888 = vmatprep.mubr.msk.bf16.mxu0 %vm3177_vm0, %v3176_v0 }
 0x3f3   :  { %v528_v41 = vpop.permute.xlu1 %527 }
 0x3f6   :  { %v3025_v57 = vpop.eup %3024 }
 0x3f7   :  { %2859 = vmatmul.mubr.msk.bf16.vlgmr.msra.gmra.mxu1 %vm1266_vm2, %v1452_v56  ;;  %v1438_v60 = vmul.f32 %v3025_v57, %v3580_v59  ;;  %v3027_v6 = vpop.eup %3026 }
 0x3f8   :  { %2869 = vmatpush3.bf16.msra.mxu1 %v1970_v23  ;;  %2870 = vmatprep.mubr.msk.bf16.mxu1 %vm3177_vm0, %v3176_v0  ;;  %v1441_v33 = vmul.f32 %v3027_v6, %v3540_v10  ;;  %v2154_v10 = vsel %vm1462_vm3, %v528_v41, 0  ;;  %v2962_v41 = vld [vmem:[#allocation8 + $0xe8] sm:$0xff]  }
 0x3f9   :  { %2880 = vmatprep.subr.bf16.mxu1 %v3176_v0  ;;  %v1454_v37 = vpack.c.bf16 %v1438_v60, %v1438_v60 }
 0x3fa   :  { %v1457_v14 = vpack.c.bf16 %v1441_v33, %v1441_v33 }
 0x3ff   :  { %2871 = vmatmul.mubr.msk.bf16.vlgmr.msra.gmra.mxu1 %vm1266_vm2, %v1454_v37 }
 0x400   :  { %2881 = vmatpush3.bf16.msra.mxu1 %v2062_v35  ;;  %2882 = vmatprep.mubr.msk.bf16.mxu1 %vm3177_vm0, %v3176_v0 }
 0x401   :  { %2892 = vmatprep.subr.bf16.mxu1 %v3176_v0 }
 0x41b   :  { %v3675_v5 = vpop.f32.mrf.mxu1 }
 0x41d   :  { %v2812_v1 = vpop.f32.mrf.mxu1  ;;  %v1404_v2 = vpop.xlane.xlu0 %1403 }
 0x41e   :  { %3028 = vrcp.f32 %v1404_v2 }
 0x41f   :  { %v1549_v59 = vpop.f32.mrf.mxu1 }
 0x421   :  { %v2813_v7 = vpop.f32.mrf.mxu1  ;;  %v1410_v9 = vpop.xlane.xlu0 %1409 }
 0x422   :  { %3030 = vrcp.f32 %v1410_v9  ;;  %v2960_v9 = vld [vmem:[#allocation8 + $0xf8] sm:$0xff]  }
 0x425   :  { %v526_v22 = vpop.permute.xlu0 %525 }
 0x426   :  { %v2108_v46 = vsel %vm1462_vm3, %v526_v22, 0 }
 0x427   :  { %2887 = vmatpush3.bf16.msra.mxu0 %v2108_v46  ;;  %v2961_v46 = vld [vmem:[#allocation8 + $0xf0] sm:$0xff]  }
 0x428   :  { %2898 = vmatprep.subr.bf16.mxu0 %v3176_v0 }
 0x42a   :  { %2889 = vmatmul.mubr.msk.bf16.vlgmr.msra.gmra.mxu0 %vm1266_vm2, %v1457_v14 }
 0x42b   :  { %v3029_v18 = vpop.eup %3028  ;;  %2914 = vmatprep.mubr.msk.bf16.mxu0 %vm3177_vm0, %v3176_v0  ;;  %2899 = vmatpush3.bf16.msra.mxu0 %v2960_v9 }
 0x42c   :  { %v1440_v19 = vmul.f32 %v3029_v18, %v3595_v8  ;;  %2900 = vmatprep.subr.bf16.mxu0 %v3176_v0 }
 0x42e   :  { %v1456_v20 = vpack.c.bf16 %v1440_v19, %v1440_v19  ;;  %v3684_v21 = vpop.f32.mrf.mxu0 }
 0x42f   :  { %v3031_v16 = vpop.eup %3030  ;;  %2901 = vmatpush3.bf16.msra.mxu0 %v2961_v46  ;;  %v3036_v46 = vld [vmem:[#allocation10] sm:$0xff] }
 0x430   :  { %2883 = vmatmul.mubr.msk.bf16.vlgmr.msra.gmra.mxu1 %vm1266_vm2, %v1456_v20  ;;  %v2806_v24 = vpop.f32.mrf.mxu0  ;;  %v1442_v25 = vmul.f32 %v3031_v16, %v3599_v63  ;;  %2902 = vmatprep.subr.bf16.mxu0 %v3176_v0 }
 0x431   :  { %2893 = vmatpush3.bf16.msra.mxu1 %v2154_v10  ;;  %2894 = vmatprep.mubr.msk.bf16.mxu1 %vm3177_vm0, %v3176_v0  ;;  %v2963_v10 = vld [vmem:[#allocation8 + $0xe0] sm:$0xff]  }
 0x432   :  { %v1503_v58 = vpop.f32.mrf.mxu0  ;;  %v1458_v53 = vpack.c.bf16 %v1442_v25, %v1442_v25 }
 0x433   :  { %2903 = vmatpush3.bf16.msra.mxu0 %v2962_v41 }
 0x434   :  { %v2807_v27 = vpop.f32.mrf.mxu0  ;;  %2904 = vmatprep.subr.bf16.mxu0 %v3176_v0 }
 0x437   :  { %2905 = vmatpush3.bf16.msra.mxu0 %v2963_v10 }
 0x438   :  { %2895 = vmatmul.mubr.msk.bf16.vlgmr.msra.gmra.mxu1 %vm1266_vm2, %v1458_v53  ;;  %2906 = vmatprep.subr.bf16.mxu0 %v3176_v0  ;;  %v2964_v53 = vld [vmem:[#allocation8 + $0xd8] sm:$0xff]  }
 0x43b   :  { %2907 = vmatpush3.bf16.msra.mxu0 %v2964_v53  ;;  %v2418_v53 = vsub.s32 6, %v3269_v26 }
 0x43c   :  { %2908 = vmatprep.subr.bf16.mxu0 %v3176_v0 }
 0x45a   :  { %v1592_v8 = vpop.f32.mrf.mxu0 }
 0x45b   :  { %v2198_v17 = vpack.c.bf16 %v1592_v8, %v1592_v8  ;;  %v2965_v8 = vld [vmem:[#allocation8 + $0xd0] sm:$0xff]  }
 0x45c   :  { %v2818_v28 = vpop.f32.mrf.mxu0  ;;  %2909 = vmatpush3.bf16.msra.mxu0 %v2965_v8 }
 0x45d   :  { %2214 = vrot.lane.b32.xlu0 %v2198_v17, %s3183_s22  ;;  %v2966_v17 = vld [vmem:[#allocation8 + $0xc8] sm:$0xff]   ;;  %2910 = vmatprep.subr.bf16.mxu0 %v3176_v0 }
 0x45e   :  { %v1595_v30 = vpop.f32.mrf.mxu0 }
 0x460   :  { %v2819_v4 = vpop.f32.mrf.mxu0  ;;  %2911 = vmatpush3.bf16.msra.mxu0 %v2966_v17 }
 0x461   :  { %2912 = vmatprep.subr.bf16.mxu0 %v3176_v0 }
 0x462   :  { %v1638_v31 = vpop.f32.mrf.mxu1 }
 0x463   :  { %v2199_v34 = vpack.c.bf16 %v1638_v31, %v1638_v31 }
 0x464   :  { %v2824_v32 = vpop.f32.mrf.mxu1 }
 0x465   :  { %2216 = vrot.lane.b32.xlu1 %v2199_v34, %s3183_s22  ;;  %v2967_v34 = vld [vmem:[#allocation8 + $0xc0] sm:$0xff]  }
 0x466   :  { %v1641_v36 = vpop.f32.mrf.mxu1  ;;  %2913 = vmatpush3.bf16.msra.mxu0 %v2967_v34 }
 0x468   :  { %v2825_v55 = vpop.f32.mrf.mxu1 }
 0x472   :  { %v1730_v63 = vpop.f32.mrf.mxu1 }
 0x473   :  { %v2201_v38 = vpack.c.bf16 %v1730_v63, %v1730_v63 }
 0x474   :  { %v2836_v39 = vpop.f32.mrf.mxu1 }
 0x475   :  { %2222 = vrot.lane.b32.xlu1 %v2201_v38, %s3182_s21 }
 0x476   :  { %v1733_v11 = vpop.f32.mrf.mxu1 }
 0x478   :  { %v2837_v29 = vpop.f32.mrf.mxu1 }
 0x47e   :  { %v1684_v42 = vpop.f32.mrf.mxu0 }
 0x47f   :  { %v2200_v3 = vpack.c.bf16 %v1684_v42, %v1684_v42 }
 0x480   :  { %v2830_v54 = vpop.f32.mrf.mxu0 }
 0x481   :  { %2220 = vrot.lane.b32.xlu0 %v2200_v3, %s3182_s21 }
 0x482   :  { %v1687_v43 = vpop.f32.mrf.mxu0 }
 0x484   :  { %v2831_v15 = vpop.f32.mrf.mxu0 }
 0x48e   :  { %v1776_v47 = vpop.f32.mrf.mxu0 }
 0x48f   :  { %v2202_v48 = vpack.c.bf16 %v1776_v47, %v1776_v47 }
 0x490   :  { %v2842_v49 = vpop.f32.mrf.mxu0 }
 0x491   :  { %2226 = vrot.lane.b32.xlu0 %v2202_v48, %s3181_s20 }
 0x492   :  { %v1779_v62 = vpop.f32.mrf.mxu0 }
 0x494   :  { %v2843_v50 = vpop.f32.mrf.mxu0 }
 0x496   :  { %v1868_v12 = vpop.f32.mrf.mxu0 }
 0x497   :  { %v2204_v51 = vpack.c.bf16 %v1868_v12, %v1868_v12 }
 0x498   :  { %v2854_v52 = vpop.f32.mrf.mxu0 }
 0x499   :  { %2232 = vrot.lane.b32.xlu0 %v2204_v51, %s3171_s28  ;;  %v2197_v52 = vpack.c.bf16 %v3675_v5, %v3675_v5 }
 0x49a   :  { %v1871_v13 = vpop.f32.mrf.mxu0 }
 0x49b   :  { %v2196_v13 = vpack.c.bf16 %v3684_v21, %v3684_v21 }
 0x49c   :  { %v2855_v40 = vpop.f32.mrf.mxu0 }
 0x49e   :  { %v1960_v45 = vpop.f32.mrf.mxu0 }
 0x49f   :  { %v2206_v44 = vpack.c.bf16 %v1960_v45, %v1960_v45 }
 0x4a0   :  { %v2866_v56 = vpop.f32.mrf.mxu0 }
 0x4a1   :  { %2238 = vrot.lane.b32.xlu0 %v2206_v44, %s3180_s19 }
 0x4a2   :  { %v1963_v57 = vpop.f32.mrf.mxu0 }
 0x4a4   :  { %v2867_v23 = vpop.f32.mrf.mxu0 }
 0x4af   :  { %v1822_v60 = vpop.f32.mrf.mxu1 }
 0x4b0   :  { %v2203_v61 = vpack.c.bf16 %v1822_v60, %v1822_v60 }
 0x4b1   :  { %v2848_v37 = vpop.f32.mrf.mxu1  ;;  %v2052_v35 = vpop.f32.mrf.mxu0 }
 0x4b2   :  { %v2208_v1 = vpack.c.bf16 %v2052_v35, %v2052_v35  ;;  %2228 = vrot.lane.b32.xlu1 %v2203_v61, %s3181_s20 }
 0x4b3   :  { %v1825_v2 = vpop.f32.mrf.mxu1  ;;  %v2878_v59 = vpop.f32.mrf.mxu0 }
 0x4b4   :  { %2244 = vrot.lane.b32.xlu0 %v2208_v1, %s3179_s4 }
 0x4b5   :  { %v2849_v6 = vpop.f32.mrf.mxu1  ;;  %v2055_v7 = vpop.f32.mrf.mxu0 }
 0x4b7   :  { %v1914_v33 = vpop.f32.mrf.mxu1  ;;  %v2879_v22 = vpop.f32.mrf.mxu0 }
 0x4b8   :  { %v2205_v14 = vpack.c.bf16 %v1914_v33, %v1914_v33  ;;  %v2309_v22 = vsub.s32 3, %v3269_v26 }
 0x4b9   :  { %v2860_v18 = vpop.f32.mrf.mxu1 }
 0x4ba   :  { %2234 = vrot.lane.b32.xlu1 %v2205_v14, %s3171_s28  ;;  %v2310_v14 = vrot.slane %v3036_v46, %v2309_v22 }
 0x4bb   :  { %v1917_v19 = vpop.f32.mrf.mxu1 }
 0x4bd   :  { %v2861_v20 = vpop.f32.mrf.mxu1 }
 0x4be   :  { %v3037_v20 = vld [vmem:[#allocation2] sm:$0xff] }
 0x4bf   :  { %v2006_v16 = vpop.f32.mrf.mxu1 }
 0x4c0   :  { %v2207_v24 = vpack.c.bf16 %v2006_v16, %v2006_v16 }
 0x4c1   :  { %v2872_v25 = vpop.f32.mrf.mxu1 }
 0x4c2   :  { %2240 = vrot.lane.b32.xlu1 %v2207_v24, %s3180_s19 }
 0x4c3   :  { %v2009_v58 = vpop.f32.mrf.mxu1 }
 0x4c4   :  { %v3038_v58 = vld [vmem:[#allocation2 + $0x8] sm:$0xff] }
 0x4c5   :  { %v2873_v27 = vpop.f32.mrf.mxu1 }
 0x4cf   :  { %v2215_v43 = vpop.permute.xlu0 %2214 }
 0x4d0   :  { %v2256_v45 = vsel %vm529_vm1, %v2196_v13, %v2215_v43  ;;  %v2444_v43 = vsub.s32 5, %v3269_v26 }
 0x4d7   :  { %v2217_v0 = vpop.permute.xlu1 %2216 }
 0x4d8   :  { %v2259_v44 = vsel %vm529_vm1, %v2197_v52, %v2217_v0 }
 0x4e7   :  { %v2223_v47 = vpop.permute.xlu1 %2222 }
 0x4e8   :  { %v2264_v56 = vsel %vm2260_vm4, %v2259_v44, %v2223_v47 }
 0x4ea   :  { %v2144_v28 = vpop.f32.mrf.mxu0 }
 0x4eb   :  { %v2210_v30 = vpack.c.bf16 %v2144_v28, %v2144_v28  ;;  %v2419_v28 = vrot.slane %v3036_v46, %v2418_v53 }
 0x4ec   :  { %v2890_v4 = vpop.f32.mrf.mxu0 }
 0x4ed   :  { %2250 = vrot.lane.b32.xlu0 %v2210_v30, %s3178_s2 }
 0x4ee   :  { %v2147_v31 = vpop.f32.mrf.mxu0 }
 0x4f0   :  { %v2098_v32 = vpop.f32.mrf.mxu1  ;;  %v2891_v36 = vpop.f32.mrf.mxu0 }
 0x4f1   :  { %v2209_v55 = vpack.c.bf16 %v2098_v32, %v2098_v32 }
 0x4f2   :  { %v2884_v63 = vpop.f32.mrf.mxu1 }
 0x4f3   :  { %2246 = vrot.lane.b32.xlu1 %v2209_v55, %s3179_s4  ;;  %v2221_v15 = vpop.permute.xlu0 %2220 }
 0x4f4   :  { %v2101_v38 = vpop.f32.mrf.mxu1  ;;  %v2262_v57 = vsel %vm2260_vm4, %v2256_v45, %v2221_v15 }
 0x4f6   :  { %v2885_v39 = vpop.f32.mrf.mxu1 }
 0x4f8   :  { %v2190_v11 = vpop.f32.mrf.mxu1 }
 0x4f9   :  { %v2211_v29 = vpack.c.bf16 %v2190_v11, %v2190_v11 }
 0x4fa   :  { %v2896_v42 = vpop.f32.mrf.mxu1 }
 0x4fb   :  { %2252 = vrot.lane.b32.xlu1 %v2211_v29, %s3178_s2 }
 0x4fc   :  { %v2193_v3 = vpop.f32.mrf.mxu1 }
 0x4fe   :  { %v2897_v54 = vpop.f32.mrf.mxu1 }
 0x4ff   :  { %v2438_v54 = vsub.s32 4, %v3269_v26 }
 0x501   :  { %v2439_v0 = vrot.slane %v3036_v46, %v2438_v54 }
 0x503   :  { %v2227_v48 = vpop.permute.xlu0 %2226 }
 0x504   :  { %v2267_v60 = vsel %vm2265_vm5, %v2262_v57, %v2227_v48  ;;  %v2445_v48 = vrot.slane %v3036_v46, %v2444_v43 }
 0x50b   :  { %v2233_v62 = vpop.permute.xlu0 %2232 }
 0x50c   :  { %v2272_v37 = vsel %vm2270_vm6, %v2267_v60, %v2233_v62 }
 0x513   :  { %v2239_v12 = vpop.permute.xlu0 %2238 }
 0x514   :  { %v2277_v21 = vsel %vm2275_vm7, %v2272_v37, %v2239_v12 }
 0x524   :  { %v2229_v49 = vpop.permute.xlu1 %2228 }
 0x525   :  { %v2269_v61 = vsel %vm2265_vm5, %v2264_v56, %v2229_v49 }
 0x526   :  { %v2245_v40 = vpop.permute.xlu0 %2244 }
 0x527   :  { %v2282_v2 = vsel %vm2280_vm8, %v2277_v21, %v2245_v40 }
 0x52c   :  { %v2235_v50 = vpop.permute.xlu1 %2234 }
 0x52d   :  { %v2274_v5 = vsel %vm2270_vm6, %v2269_v61, %v2235_v50 }
 0x534   :  { %v2241_v51 = vpop.permute.xlu1 %2240 }
 0x535   :  { %v2279_v1 = vsel %vm2275_vm7, %v2274_v5, %v2241_v51 }
 0x55f   :  { %v2251_v35 = vpop.permute.xlu0 %2250 }
 0x560   :  { %v2287_v7 = vsel %vm2285_vm9, %v2282_v2, %v2251_v35 }
 0x565   :  { %v2247_v23 = vpop.permute.xlu1 %2246 }
 0x566   :  { %v2284_v59 = vsel %vm2280_vm8, %v2279_v1, %v2247_v23 }
 0x56d   :  { %v2253_v6 = vpop.permute.xlu1 %2252 }
 0x56e   :  { %v2289_v9 = vsel %vm2285_vm9, %v2284_v59, %v2253_v6 }
 0x56f   :  { %v2531_v33 = vcombine.low %v2287_v7, %v2289_v9 }
 0x571   :  { %2915 = vmatmul.mubr.bf16.vlgmr.msra.gmra.mxu0 %v2531_v33 }
 0x631   :  { %v2399_v18 = vpop.f32.mrf.mxu0 }
 0x632   :  { %v2400_v19 = vadd.f32 %v2399_v18, %v2310_v14 }
 0x633   :  { %v2916_v41 = vpop.f32.mrf.mxu0 }
 0x634   :  { %v2406_v16 = vadd.f32 %v3037_v20, %v2400_v19 }
 0x635   :  { %v2402_v10 = vpop.f32.mrf.mxu0 }
 0x636   :  { %v2403_v24 = vadd.f32 %v2402_v10, %v2310_v14  ;;  %2408 = vadd.xlane.f32.xlu0 %v2406_v16 }
 0x637   :  { %v2917_v25 = vpop.f32.mrf.mxu0 }
 0x638   :  { %v2407_v27 = vadd.f32 %v3038_v58, %v2403_v24 }
 0x63a   :  { %2410 = vadd.xlane.f32.xlu1 %v2407_v27 }
 0x6bf   :  { %v2409_v8 = vpop.xlane.xlu0 %2408 }
 0x6c0   :  { %v2412_v17 = vmul.f32 0.03125, %v2409_v8 }
 0x6c2   :  { %v2414_v30 = vsub.f32 %v2406_v16, %v2412_v17 }
 0x6c3   :  { %v2411_v4 = vpop.xlane.xlu1 %2410 }
 0x6c4   :  { %v2413_v31 = vmul.f32 0.03125, %v2411_v4  ;;  %v2420_v34 = vmul.f32 %v2419_v28, %v2414_v30 }
 0x6c6   :  { %v2415_v32 = vsub.f32 %v2407_v27, %v2413_v31  ;;  %v2422_v36 = vmul.f32 %v2420_v34, %v2420_v34 }
 0x6c8   :  { %2424 = vadd.xlane.f32.xlu0 %v2422_v36  ;;  %v2421_v55 = vmul.f32 %v2419_v28, %v2415_v32 }
 0x6ca   :  { %v2423_v63 = vmul.f32 %v2421_v55, %v2421_v55 }
 0x6cc   :  { %2426 = vadd.xlane.f32.xlu0 %v2423_v63 }
 0x751   :  { %v2425_v38 = vpop.xlane.xlu0 %2424 }
 0x752   :  { %v2428_v39 = vmul.f32 0.03125, %v2425_v38 }
 0x754   :  { %v2430_v11 = vadd.f32 1e-05, %v2428_v39 }
 0x755   :  { %v2427_v29 = vpop.xlane.xlu0 %2426 }
 0x756   :  { %3032 = vrsqrt.f32 %v2430_v11  ;;  %v2429_v42 = vmul.f32 0.03125, %v2427_v29 }
 0x758   :  { %v2431_v3 = vadd.f32 1e-05, %v2429_v42 }
 0x75a   :  { %3034 = vrsqrt.f32 %v2431_v3 }
 0x763   :  { %v3033_v15 = vpop.eup %3032 }
 0x764   :  { %v2434_v47 = vmul.f32 %v3033_v15, %v2420_v34 }
 0x766   :  { %v2440_v49 = vmul.f32 %v2439_v0, %v2434_v47 }
 0x767   :  { %v3035_v62 = vpop.eup %3034 }
 0x768   :  { %v2435_v50 = vmul.f32 %v3035_v62, %v2421_v55  ;;  %v2446_v12 = vadd.f32 %v2445_v48, %v2440_v49 }
 0x76a   :  { %v2441_v51 = vmul.f32 %v2439_v0, %v2435_v50  ;;  %2448 = vst [vmem:[#allocation11] sm:$0xff] %v2446_v12 }
 0x76c   :  { %v2447_v52 = vadd.f32 %v2445_v48, %v2441_v51 }
 0x76e   :  { %2449 = vst [vmem:[#allocation11 + $0x8] sm:$0xff] %v2447_v52 }
 0x76f   :  { %3150 = shalt.err (!%p3147_p1)
}
 0x770   :  { %2461 = dma.vmem_to_hbm [thread:$0]  %s2456_s26, 256, %s3734_s5, [#allocation4], %s3169_s23, %s3169_s23, %s3170_s24  }
 0x771   :  { %3165 = dma.done.wait [#allocation4], 256  }
 0x772   :  { %3166 = vsyncadd [#allocation4], 4294967040 }
 0x773   :  { %2465 = vsyncpa [#allocation3], 1 }
 0x774   :  { %2466 = vsyncpa [#allocation6], 1 }
 0x775   :  { %2467 = vsyncpa [#allocation9], 1 }
 0x776   :  { %2468 = vsyncpa [#allocation4], 1 }

</bundles_post_ra>
